<compile_context>
chip_gen: v6e
topology: v6e:2x2x1
jax: 0.10.0
libtpu: 0.0.40
codegen_flags: <defaults>
</compile_context>

<pallas_src>
import functools
from collections import deque

import jax
import jax.numpy as jnp
from jax.experimental import pallas as pl
from jax.experimental.pallas import tpu as pltpu


# -----------------------------------------------------------------------------
# Pallas kernel: one autoregressive step for one tile of agent rows.
# Grid = (row_tiles, n_steps); rows "parallel" (outer), steps "arbitrary" (inner).
# -----------------------------------------------------------------------------
def _qcnet_fused_kernel(x_ref, w_in_ref, b_in_ref, w_cat_ref, b_mix_ref,
                        emb_out_ref, cur_out_ref,
                        mid_buf, his_buf, ctx_buf, *, ts, th):
    # x_ref   : (1, tile, Fp)     current-step agent features
    # mid_buf : (ts, tile, Dp)    VMEM ring buffer = x_a_mid_emb deque
    # his_buf : (th, tile, Dp)    VMEM ring buffer = x_a_his deque
    # ctx_buf : (tile, 3*Dp)      persistent [emb | sum(mid) | sum(his)] state
    s = pl.program_id(1)
    d_pad = mid_buf.shape[2]

    # Cold start: deques and running sums are all-zeros before step 0 of each
    # row tile (steps are the inner grid axis, so this fires once per tile).
    @pl.when(s == 0)
    def _():
        mid_buf[...] = jnp.zeros_like(mid_buf)
        his_buf[...] = jnp.zeros_like(his_buf)
        ctx_buf[...] = jnp.zeros_like(ctx_buf)

    # x_a_cur_emb = relu(x @ W_in + b_in)
    x = x_ref[0]                                                  # (tile, Fp)
    emb = jnp.dot(x, w_in_ref[...], preferred_element_type=jnp.float32)
    emb = jnp.maximum(emb + b_in_ref[...], 0.0)                   # (tile, Dp)

    # Stage the fresh embedding; the mid/his slots already hold the running
    # deque sums from previous steps (the 1/len mean factors are folded into
    # W_mid / W_his on the host), so the whole context is ready for one fused
    # K = 3*Dp MXU contraction.
    ctx_buf[:, 0:d_pad] = emb
    h = jnp.dot(ctx_buf[...], w_cat_ref[...],
                preferred_element_type=jnp.float32) + b_mix_ref[...]
    cur = jnp.tanh(h)                                             # (tile, Dp)

    # Deque append AFTER the model step (as in the module): incremental
    # running-sum update + ring-buffer slot overwrite.  ts/th are tiny static
    # constants, so the slot dispatch unrolls to a couple of pl.when blocks.
    slot_mid = s % ts
    for t in range(ts):
        @pl.when(slot_mid == t)
        def _(t=t):
            ctx_buf[:, d_pad:2 * d_pad] += emb - mid_buf[t]
            mid_buf[t] = emb
    slot_his = s % th
    for t in range(th):
        @pl.when(slot_his == t)
        def _(t=t):
            ctx_buf[:, 2 * d_pad:3 * d_pad] += cur - his_buf[t]
            his_buf[t] = cur

    # Only the final step's prediction leaves the kernel (lane-dense stores).
    @pl.when(s == pl.num_programs(1) - 1)
    def _():
        emb_out_ref[...] = emb.astype(emb_out_ref.dtype)
        cur_out_ref[...] = cur.astype(cur_out_ref.dtype)


def _round_up(v, m):
    return (v + m - 1) // m * m


def qcnet_model_steps(x_steps, params, *, time_span, t_his, tile=256):
    """Run all cold-start autoregressive steps in ONE fused pallas_call.

    x_steps : (B, A, n_steps, F) agent features for every step of the loop
    returns : x_a_cur_emb, x_a_cur of the FINAL step, each (B, A, 1, D)
    """
    B, A, n_steps, F = x_steps.shape
    D = params["w_in"].shape[1]
    N = B * A

    f_pad = _round_up(F, 128)          # lane-dense feature dim
    d_pad = _round_up(D, 128)          # lane-dense hidden dim
    tile = min(tile, _round_up(N, 8))  # row tile (multiple of 8 sublanes)
    n_pad = _round_up(N, tile)

    # (n_steps, n_pad, f_pad): steps leading so each grid point DMAs one
    # lane-dense (tile, f_pad) slab; zero-pad rows/features.
    x = jnp.transpose(x_steps.reshape(N, n_steps, F).astype(jnp.float32),
                      (1, 0, 2))
    x = jnp.pad(x, ((0, 0), (0, n_pad - N), (0, f_pad - F)))

    # Zero-padded weights; the three context weights are stacked into one
    # (3*d_pad, d_pad) matrix for the fused contraction, with the deque-mean
    # 1/len factors folded in (so the kernel only keeps running SUMS).
    w_in = jnp.zeros((f_pad, d_pad), jnp.float32).at[:F, :D].set(params["w_in"])
    b_in = jnp.zeros((1, d_pad), jnp.float32).at[:, :D].set(params["b_in"])
    w_cat = jnp.zeros((3 * d_pad, d_pad), jnp.float32)
    w_cat = w_cat.at[0:D, :D].set(params["w_emb"])
    w_cat = w_cat.at[d_pad:d_pad + D, :D].set(
        params["w_mid"] * (1.0 / float(time_span)))
    w_cat = w_cat.at[2 * d_pad:2 * d_pad + D, :D].set(
        params["w_his"] * (1.0 / float(t_his)))
    b_mix = jnp.zeros((1, d_pad), jnp.float32).at[:, :D].set(params["b_mix"])

    kernel = functools.partial(_qcnet_fused_kernel, ts=time_span, th=t_his)

    emb, cur = pl.pallas_call(
        kernel,
        out_shape=(jax.ShapeDtypeStruct((n_pad, d_pad), jnp.float32),
                   jax.ShapeDtypeStruct((n_pad, d_pad), jnp.float32)),
        grid_spec=pltpu.PrefetchScalarGridSpec(
            num_scalar_prefetch=0,
            grid=(n_pad // tile, n_steps),
            in_specs=[
                pl.BlockSpec((1, tile, f_pad), lambda i, s: (s, i, 0)),
                pl.BlockSpec((f_pad, d_pad), lambda i, s: (0, 0)),
                pl.BlockSpec((1, d_pad), lambda i, s: (0, 0)),
                pl.BlockSpec((3 * d_pad, d_pad), lambda i, s: (0, 0)),
                pl.BlockSpec((1, d_pad), lambda i, s: (0, 0)),
            ],
            out_specs=[
                pl.BlockSpec((tile, d_pad), lambda i, s: (i, 0)),
                pl.BlockSpec((tile, d_pad), lambda i, s: (i, 0)),
            ],
            scratch_shapes=[
                pltpu.VMEM((time_span, tile, d_pad), jnp.float32),  # mid deque
                pltpu.VMEM((t_his, tile, d_pad), jnp.float32),      # his deque
                pltpu.VMEM((tile, 3 * d_pad), jnp.float32),         # ctx state
            ],
        ),
        compiler_params=pltpu.CompilerParams(
            dimension_semantics=("parallel", "arbitrary"),
            vmem_limit_bytes=32 * 1024 * 1024,
        ),
    )(x, w_in, b_in, w_cat, b_mix)

    emb = emb[:N, :D].reshape(B, A, 1, D)
    cur = cur[:N, :D].reshape(B, A, 1, D)
    return emb, cur


# -----------------------------------------------------------------------------
# Glue mirroring the nn.Module's forward (cold-start path) + postprocess.
# -----------------------------------------------------------------------------
def postprocess(pred, data):
    # Mask the final prediction with the last valid-mask step.
    vm = data["agent"]["valid_mask"][:, :, -1:].astype(jnp.float32)  # (B, A, 1)
    traj = pred["x_a_cur"] * vm[..., None]
    return {"traj": traj, "x_a_cur_emb": pred["x_a_cur_emb"]}


def qcnet_oe_ir_infer_forward(data, example_data, params,
                              quant_infer_cold_start=True, tile=256):
    """JAX re-implementation of QCNetOEIrInfer.forward (cold-start path)."""
    if not quant_infer_cold_start:
        print("Hbir Infer only supports cold start.")
        return None

    num_historical_steps = example_data["agent"]["valid_mask"].shape[2]
    num_t2m_steps = example_data["agent"]["x_a_his"].shape[2] + 1
    B, A, time_span, D = example_data["agent"]["x_a_mid_emb"][0].shape
    t_his = num_t2m_steps - 1
    n_steps = num_t2m_steps + time_span
    # The module's preprocess slices one step per iteration starting at
    # cur_step + 1; the fused kernel consumes all n_steps slices at once.
    first_step = num_historical_steps - num_t2m_steps - time_span + 1

    x_steps = data["agent"]["x"][:, :, first_step:first_step + n_steps, :]
    emb, cur = qcnet_model_steps(x_steps, params,
                                 time_span=time_span, t_his=t_his, tile=tile)
    pred = {"x_a_cur_emb": emb, "x_a_cur": cur}
    return postprocess(pred, data)
    # TODO(synk): the opaque HbirModule graph itself cannot be reproduced; it
    # is replaced by the deterministic synthetic per-step encoder above.


# -----------------------------------------------------------------------------
# Pure-JAX reference mirroring the module's deque-driven loop (for checking).
# -----------------------------------------------------------------------------
def qcnet_reference_forward(data, example_data, params):
    hp = jax.lax.Precision.HIGHEST
    num_historical_steps = example_data["agent"]["valid_mask"].shape[2]
    num_t2m_steps = example_data["agent"]["x_a_his"].shape[2] + 1
    B, A, time_span, D = example_data["agent"]["x_a_mid_emb"][0].shape
    cur_step = num_historical_steps - num_t2m_steps - time_span

    x_a_mid_emb = deque(maxlen=time_span)
    x_a_his_enc = deque(maxlen=num_t2m_steps - 1)
    for _ in range(num_t2m_steps - 1):
        x_a_his_enc.append(jnp.zeros((B, A, 1, D), jnp.float32))
    for _ in range(time_span):
        x_a_mid_emb.append(jnp.zeros((B, A, 1, D), jnp.float32))

    pred = None
    for _ in range(num_t2m_steps + time_span):
        cur_step += 1
        x_cur = data["agent"]["x"][:, :, cur_step:cur_step + 1, :]
        mid_cat = jnp.concatenate(list(x_a_mid_emb), axis=2)
        his_cat = jnp.concatenate(list(x_a_his_enc), axis=2)

        emb = jnp.einsum("btif,fd->btid", x_cur, params["w_in"], precision=hp)
        emb = jnp.maximum(emb + params["b_in"][None, None], 0.0)
        mid_ctx = jnp.mean(mid_cat, axis=2, keepdims=True)
        his_ctx = jnp.mean(his_cat, axis=2, keepdims=True)
        h = (jnp.einsum("btid,de->btie", emb, params["w_emb"], precision=hp)
             + jnp.einsum("btid,de->btie", mid_ctx, params["w_mid"], precision=hp)
             + jnp.einsum("btid,de->btie", his_ctx, params["w_his"], precision=hp)
             + params["b_mix"][None, None])
        cur = jnp.tanh(h)

        pred = {"x_a_cur_emb": emb, "x_a_cur": cur}
        x_a_mid_emb.append(emb)
        x_a_his_enc.append(cur)
    return postprocess(pred, data)


# -----------------------------------------------------------------------------
# Deterministic parameters / inputs and smoke test.
# -----------------------------------------------------------------------------
def make_params(key, F, D):
    ks = jax.random.split(key, 4)
    scale = 0.1
    return {
        "w_in":  (scale * jax.random.normal(ks[0], (F, D))).astype(jnp.float32),
        "b_in":  jnp.zeros((1, D), jnp.float32),
        "w_emb": (scale * jax.random.normal(ks[1], (D, D))).astype(jnp.float32),
        "w_mid": (scale * jax.random.normal(ks[2], (D, D))).astype(jnp.float32),
        "w_his": (scale * jax.random.normal(ks[3], (D, D))).astype(jnp.float32),
        "b_mix": jnp.zeros((1, D), jnp.float32),
    }


if __name__ == "__main__":
    key = jax.random.PRNGKey(0)
    k_x, k_p = jax.random.split(key)

    # Small shapes consistent with the module's forward.
    B, A = 2, 64                # batch, agents -> B*A = 128 rows (one full tile)
    F, D = 16, 32               # raw feature dim, hidden dim (padded to 128 lanes)
    time_span = 2
    num_t2m_steps = 4
    num_historical_steps = 8
    T_total = num_historical_steps + 1  # extra step so cur_step never OOBs

    data = {
        "agent": {
            "x": jax.random.normal(k_x, (B, A, T_total, F), jnp.float32),
            "valid_mask": jnp.ones((B, A, num_historical_steps), jnp.bool_),
        }
    }
    # example_data only drives shape inference, exactly as in the module.
    example_data = {
        "agent": {
            "valid_mask": jnp.ones((B, A, num_historical_steps), jnp.bool_),
            "x_a_his": jnp.zeros((B, A, num_t2m_steps - 1, D), jnp.float32),
            "x_a_mid_emb": [jnp.zeros((B, A, time_span, D), jnp.float32)],
        }
    }
    params = make_params(k_p, F, D)

    out = qcnet_oe_ir_infer_forward(data, example_data, params,
                                    quant_infer_cold_start=True)
    jax.block_until_ready(out["traj"])
    jax.block_until_ready(out["x_a_cur_emb"])
    assert out["traj"].shape == (B, A, 1, D)
    assert out["x_a_cur_emb"].shape == (B, A, 1, D)

    # Correctness vs. a pure-JAX reference of the same deque-driven loop.
    ref = qcnet_reference_forward(data, example_data, params)
    assert jnp.allclose(out["traj"], ref["traj"], atol=2e-2, rtol=2e-2), \
        float(jnp.max(jnp.abs(out["traj"] - ref["traj"])))
    assert jnp.allclose(out["x_a_cur_emb"], ref["x_a_cur_emb"],
                        atol=2e-2, rtol=2e-2), \
        float(jnp.max(jnp.abs(out["x_a_cur_emb"] - ref["x_a_cur_emb"])))

    print("KERNEL_OK")
</pallas_src>

<mosaic_0001>
module attributes {stable_mosaic.version = 11 : i64} {
  func.func @_qcnet_fused_kernel(%arg0: i32, %arg1: i32, %arg2: memref<1x128x128xf32, #tpu.memory_space<vmem>>, %arg3: memref<128x128xf32, #tpu.memory_space<vmem>>, %arg4: memref<1x128xf32, #tpu.memory_space<vmem>>, %arg5: memref<384x128xf32, #tpu.memory_space<vmem>>, %arg6: memref<1x128xf32, #tpu.memory_space<vmem>>, %arg7: memref<128x128xf32, #tpu.memory_space<vmem>>, %arg8: memref<128x128xf32, #tpu.memory_space<vmem>>, %arg9: memref<2x128x128xf32, #tpu.memory_space<vmem>>, %arg10: memref<3x128x128xf32, #tpu.memory_space<vmem>>, %arg11: memref<128x384xf32, #tpu.memory_space<vmem>>) attributes {dimension_semantics = [#tpu.dimension_semantics<parallel>, #tpu.dimension_semantics<arbitrary>], iteration_bounds = array<i64: 1, 6>, scalar_prefetch = 0 : i64, scratch_operands = 3 : i64, tpu.core_type = #tpu.core_type<tc>, window_params = [{transform_indices = @transform_0, window_bounds = array<i64: 1, 128, 128>}, {pipeline_mode = #tpu.pipeline_mode<synchronous>, transform_indices = @transform_1, window_bounds = array<i64: 128, 128>}, {pipeline_mode = #tpu.pipeline_mode<synchronous>, transform_indices = @transform_2, window_bounds = array<i64: 1, 128>}, {pipeline_mode = #tpu.pipeline_mode<synchronous>, transform_indices = @transform_3, window_bounds = array<i64: 384, 128>}, {pipeline_mode = #tpu.pipeline_mode<synchronous>, transform_indices = @transform_4, window_bounds = array<i64: 1, 128>}, {transform_indices = @transform_5, window_bounds = array<i64: 128, 128>}, {transform_indices = @transform_6, window_bounds = array<i64: 128, 128>}]} {
    %c0_i32 = arith.constant 0 : i32
    %0 = arith.cmpi eq, %arg1, %c0_i32 : i32
    %1 = arith.extui %0 : i1 to i32
    %c0_i32_0 = arith.constant 0 : i32
    %2 = arith.cmpi ne, %1, %c0_i32_0 : i32
    scf.if %2 {
      %cst_37 = arith.constant 0.000000e+00 : f32
      %58 = vector.broadcast %cst_37 : f32 to vector<2x128x128xf32>
      %c0_38 = arith.constant 0 : index
      %c0_39 = arith.constant 0 : index
      %c0_40 = arith.constant 0 : index
      %59 = vector.load %arg9[%c0_38, %c0_39, %c0_40] : memref<2x128x128xf32, #tpu.memory_space<vmem>>, vector<2x128x128xf32>
      tpu.vector_store %arg9[%c0_38, %c0_39, %c0_40], %58 {strides = array<i32>} : memref<2x128x128xf32, #tpu.memory_space<vmem>>, vector<2x128x128xf32>,
      %cst_41 = arith.constant 0.000000e+00 : f32
      %60 = vector.broadcast %cst_41 : f32 to vector<3x128x128xf32>
      %c0_42 = arith.constant 0 : index
      %c0_43 = arith.constant 0 : index
      %c0_44 = arith.constant 0 : index
      %61 = vector.load %arg10[%c0_42, %c0_43, %c0_44] : memref<3x128x128xf32, #tpu.memory_space<vmem>>, vector<3x128x128xf32>
      tpu.vector_store %arg10[%c0_42, %c0_43, %c0_44], %60 {strides = array<i32>} : memref<3x128x128xf32, #tpu.memory_space<vmem>>, vector<3x128x128xf32>,
      %cst_45 = arith.constant 0.000000e+00 : f32
      %62 = vector.broadcast %cst_45 : f32 to vector<128x384xf32>
      %c0_46 = arith.constant 0 : index
      %c0_47 = arith.constant 0 : index
      %63 = vector.load %arg11[%c0_46, %c0_47] : memref<128x384xf32, #tpu.memory_space<vmem>>, vector<128x384xf32>
      tpu.vector_store %arg11[%c0_46, %c0_47], %62 {strides = array<i32>} : memref<128x384xf32, #tpu.memory_space<vmem>>, vector<128x384xf32>,
    } else {
    }
    %c0 = arith.constant 0 : index
    %c0_1 = arith.constant 0 : index
    %c0_2 = arith.constant 0 : index
    %3 = vector.load %arg2[%c0, %c0_1, %c0_2] : memref<1x128x128xf32, #tpu.memory_space<vmem>>, vector<1x128x128xf32>
    %4 = vector.shape_cast %3 : vector<1x128x128xf32> to vector<128x128xf32>
    %c0_3 = arith.constant 0 : index
    %c0_4 = arith.constant 0 : index
    %5 = vector.load %arg3[%c0_3, %c0_4] : memref<128x128xf32, #tpu.memory_space<vmem>>, vector<128x128xf32>
    %cst = arith.constant dense<0.000000e+00> : vector<128x128xf32>
    %6 = tpu.matmul %4, %5, %cst {dimension_numbers = #tpu.dot_dimension_numbers<[1], [0], [0], [1], [0, 0, 1, 1], [], []>} : vector<128x128xf32>, vector<128x128xf32>, vector<128x128xf32> -> vector<128x128xf32>
    %c0_5 = arith.constant 0 : index
    %c0_6 = arith.constant 0 : index
    %7 = vector.load %arg4[%c0_5, %c0_6] : memref<1x128xf32, #tpu.memory_space<vmem>>, vector<1x128xf32>
    %8 = vector.broadcast %7 : vector<1x128xf32> to vector<128x128xf32>
    %9 = arith.addf %6, %8 : vector<128x128xf32>
    %cst_7 = arith.constant 0.000000e+00 : f32
    %10 = vector.broadcast %cst_7 : f32 to vector<128x128xf32>
    %11 = arith.maximumf %9, %10 : vector<128x128xf32>
    %c0_8 = arith.constant 0 : index
    %c0_9 = arith.constant 0 : index
    %12 = vector.load %arg11[%c0_8, %c0_9] : memref<128x384xf32, #tpu.memory_space<vmem>>, vector<128x128xf32>
    tpu.vector_store %arg11[%c0_8, %c0_9], %11 {strides = array<i32>} : memref<128x384xf32, #tpu.memory_space<vmem>>, vector<128x128xf32>,
    %c0_10 = arith.constant 0 : index
    %c0_11 = arith.constant 0 : index
    %13 = vector.load %arg11[%c0_10, %c0_11] : memref<128x384xf32, #tpu.memory_space<vmem>>, vector<128x384xf32>
    %c0_12 = arith.constant 0 : index
    %c0_13 = arith.constant 0 : index
    %14 = vector.load %arg5[%c0_12, %c0_13] : memref<384x128xf32, #tpu.memory_space<vmem>>, vector<384x128xf32>
    %cst_14 = arith.constant dense<0.000000e+00> : vector<128x128xf32>
    %15 = tpu.matmul %13, %14, %cst_14 {dimension_numbers = #tpu.dot_dimension_numbers<[1], [0], [0], [1], [0, 0, 1, 1], [], []>} : vector<128x384xf32>, vector<384x128xf32>, vector<128x128xf32> -> vector<128x128xf32>
    %c0_15 = arith.constant 0 : index
    %c0_16 = arith.constant 0 : index
    %16 = vector.load %arg6[%c0_15, %c0_16] : memref<1x128xf32, #tpu.memory_space<vmem>>, vector<1x128xf32>
    %17 = vector.broadcast %16 : vector<1x128xf32> to vector<128x128xf32>
    %18 = arith.addf %15, %17 : vector<128x128xf32>
    %19 = math.tanh %18 : vector<128x128xf32>
    %c2_i32 = arith.constant 2 : i32
    %c0_i32_17 = arith.constant 0 : i32
    %20 = arith.cmpi eq, %c2_i32, %c0_i32_17 : i32
    %c1_i32 = arith.constant 1 : i32
    %21 = arith.select %20, %c1_i32, %c2_i32 : i32
    %22 = arith.remsi %arg1, %21 : i32
    %c0_i32_18 = arith.constant 0 : i32
    %23 = arith.cmpi ne, %22, %c0_i32_18 : i32
    %c0_i32_19 = arith.constant 0 : i32
    %24 = arith.cmpi slt, %22, %c0_i32_19 : i32
    %c0_i32_20 = arith.constant 0 : i32
    %25 = arith.cmpi slt, %21, %c0_i32_20 : i32
    %26 = arith.xori %24, %25 : i1
    %27 = arith.andi %26, %23 : i1
    %28 = arith.addi %22, %21 : i32
    %29 = arith.select %27, %28, %22 : i32
    %c0_i32_21 = arith.constant 0 : i32
    %30 = arith.cmpi eq, %29, %c0_i32_21 : i32
    %31 = arith.extui %30 : i1 to i32
    %c0_i32_22 = arith.constant 0 : i32
    %32 = arith.cmpi ne, %31, %c0_i32_22 : i32
    scf.if %32 {
      %c0_37 = arith.constant 0 : index
      %c128 = arith.constant 128 : index
      %58 = vector.load %arg11[%c0_37, %c128] : memref<128x384xf32, #tpu.memory_space<vmem>>, vector<128x128xf32>
      %c0_38 = arith.constant 0 : index
      %c0_39 = arith.constant 0 : index
      %c0_40 = arith.constant 0 : index
      %59 = vector.load %arg9[%c0_38, %c0_39, %c0_40] : memref<2x128x128xf32, #tpu.memory_space<vmem>>, vector<1x128x128xf32>
      %60 = vector.shape_cast %59 : vector<1x128x128xf32> to vector<128x128xf32>
      %61 = arith.subf %11, %60 : vector<128x128xf32>
      %62 = arith.addf %58, %61 : vector<128x128xf32>
      %c0_41 = arith.constant 0 : index
      %c128_42 = arith.constant 128 : index
      %63 = vector.load %arg11[%c0_41, %c128_42] : memref<128x384xf32, #tpu.memory_space<vmem>>, vector<128x128xf32>
      tpu.vector_store %arg11[%c0_41, %c128_42], %62 {strides = array<i32>} : memref<128x384xf32, #tpu.memory_space<vmem>>, vector<128x128xf32>,
      %c0_43 = arith.constant 0 : index
      %c0_44 = arith.constant 0 : index
      %c0_45 = arith.constant 0 : index
      %64 = vector.load %arg9[%c0_43, %c0_44, %c0_45] : memref<2x128x128xf32, #tpu.memory_space<vmem>>, vector<1x128x128xf32>
      %65 = vector.shape_cast %64 : vector<1x128x128xf32> to vector<128x128xf32>
      %66 = vector.shape_cast %11 : vector<128x128xf32> to vector<1x128x128xf32>
      tpu.vector_store %arg9[%c0_43, %c0_44, %c0_45], %66 {strides = array<i32>} : memref<2x128x128xf32, #tpu.memory_space<vmem>>, vector<1x128x128xf32>,
    } else {
    }
    %c1_i32_23 = arith.constant 1 : i32
    %33 = arith.cmpi eq, %29, %c1_i32_23 : i32
    %34 = arith.extui %33 : i1 to i32
    %c0_i32_24 = arith.constant 0 : i32
    %35 = arith.cmpi ne, %34, %c0_i32_24 : i32
    scf.if %35 {
      %c0_37 = arith.constant 0 : index
      %c128 = arith.constant 128 : index
      %58 = vector.load %arg11[%c0_37, %c128] : memref<128x384xf32, #tpu.memory_space<vmem>>, vector<128x128xf32>
      %c1 = arith.constant 1 : index
      %c0_38 = arith.constant 0 : index
      %c0_39 = arith.constant 0 : index
      %59 = vector.load %arg9[%c1, %c0_38, %c0_39] : memref<2x128x128xf32, #tpu.memory_space<vmem>>, vector<1x128x128xf32>
      %60 = vector.shape_cast %59 : vector<1x128x128xf32> to vector<128x128xf32>
      %61 = arith.subf %11, %60 : vector<128x128xf32>
      %62 = arith.addf %58, %61 : vector<128x128xf32>
      %c0_40 = arith.constant 0 : index
      %c128_41 = arith.constant 128 : index
      %63 = vector.load %arg11[%c0_40, %c128_41] : memref<128x384xf32, #tpu.memory_space<vmem>>, vector<128x128xf32>
      tpu.vector_store %arg11[%c0_40, %c128_41], %62 {strides = array<i32>} : memref<128x384xf32, #tpu.memory_space<vmem>>, vector<128x128xf32>,
      %c1_42 = arith.constant 1 : index
      %c0_43 = arith.constant 0 : index
      %c0_44 = arith.constant 0 : index
      %64 = vector.load %arg9[%c1_42, %c0_43, %c0_44] : memref<2x128x128xf32, #tpu.memory_space<vmem>>, vector<1x128x128xf32>
      %65 = vector.shape_cast %64 : vector<1x128x128xf32> to vector<128x128xf32>
      %66 = vector.shape_cast %11 : vector<128x128xf32> to vector<1x128x128xf32>
      tpu.vector_store %arg9[%c1_42, %c0_43, %c0_44], %66 {strides = array<i32>} : memref<2x128x128xf32, #tpu.memory_space<vmem>>, vector<1x128x128xf32>,
    } else {
    }
    %c3_i32 = arith.constant 3 : i32
    %c0_i32_25 = arith.constant 0 : i32
    %36 = arith.cmpi eq, %c3_i32, %c0_i32_25 : i32
    %c1_i32_26 = arith.constant 1 : i32
    %37 = arith.select %36, %c1_i32_26, %c3_i32 : i32
    %38 = arith.remsi %arg1, %37 : i32
    %c0_i32_27 = arith.constant 0 : i32
    %39 = arith.cmpi ne, %38, %c0_i32_27 : i32
    %c0_i32_28 = arith.constant 0 : i32
    %40 = arith.cmpi slt, %38, %c0_i32_28 : i32
    %c0_i32_29 = arith.constant 0 : i32
    %41 = arith.cmpi slt, %37, %c0_i32_29 : i32
    %42 = arith.xori %40, %41 : i1
    %43 = arith.andi %42, %39 : i1
    %44 = arith.addi %38, %37 : i32
    %45 = arith.select %43, %44, %38 : i32
    %c0_i32_30 = arith.constant 0 : i32
    %46 = arith.cmpi eq, %45, %c0_i32_30 : i32
    %47 = arith.extui %46 : i1 to i32
    %c0_i32_31 = arith.constant 0 : i32
    %48 = arith.cmpi ne, %47, %c0_i32_31 : i32
    scf.if %48 {
      %c0_37 = arith.constant 0 : index
      %c256 = arith.constant 256 : index
      %58 = vector.load %arg11[%c0_37, %c256] : memref<128x384xf32, #tpu.memory_space<vmem>>, vector<128x128xf32>
      %c0_38 = arith.constant 0 : index
      %c0_39 = arith.constant 0 : index
      %c0_40 = arith.constant 0 : index
      %59 = vector.load %arg10[%c0_38, %c0_39, %c0_40] : memref<3x128x128xf32, #tpu.memory_space<vmem>>, vector<1x128x128xf32>
      %60 = vector.shape_cast %59 : vector<1x128x128xf32> to vector<128x128xf32>
      %61 = arith.subf %19, %60 : vector<128x128xf32>
      %62 = arith.addf %58, %61 : vector<128x128xf32>
      %c0_41 = arith.constant 0 : index
      %c256_42 = arith.constant 256 : index
      %63 = vector.load %arg11[%c0_41, %c256_42] : memref<128x384xf32, #tpu.memory_space<vmem>>, vector<128x128xf32>
      tpu.vector_store %arg11[%c0_41, %c256_42], %62 {strides = array<i32>} : memref<128x384xf32, #tpu.memory_space<vmem>>, vector<128x128xf32>,
      %c0_43 = arith.constant 0 : index
      %c0_44 = arith.constant 0 : index
      %c0_45 = arith.constant 0 : index
      %64 = vector.load %arg10[%c0_43, %c0_44, %c0_45] : memref<3x128x128xf32, #tpu.memory_space<vmem>>, vector<1x128x128xf32>
      %65 = vector.shape_cast %64 : vector<1x128x128xf32> to vector<128x128xf32>
      %66 = vector.shape_cast %19 : vector<128x128xf32> to vector<1x128x128xf32>
      tpu.vector_store %arg10[%c0_43, %c0_44, %c0_45], %66 {strides = array<i32>} : memref<3x128x128xf32, #tpu.memory_space<vmem>>, vector<1x128x128xf32>,
    } else {
    }
    %c1_i32_32 = arith.constant 1 : i32
    %49 = arith.cmpi eq, %45, %c1_i32_32 : i32
    %50 = arith.extui %49 : i1 to i32
    %c0_i32_33 = arith.constant 0 : i32
    %51 = arith.cmpi ne, %50, %c0_i32_33 : i32
    scf.if %51 {
      %c0_37 = arith.constant 0 : index
      %c256 = arith.constant 256 : index
      %58 = vector.load %arg11[%c0_37, %c256] : memref<128x384xf32, #tpu.memory_space<vmem>>, vector<128x128xf32>
      %c1 = arith.constant 1 : index
      %c0_38 = arith.constant 0 : index
      %c0_39 = arith.constant 0 : index
      %59 = vector.load %arg10[%c1, %c0_38, %c0_39] : memref<3x128x128xf32, #tpu.memory_space<vmem>>, vector<1x128x128xf32>
      %60 = vector.shape_cast %59 : vector<1x128x128xf32> to vector<128x128xf32>
      %61 = arith.subf %19, %60 : vector<128x128xf32>
      %62 = arith.addf %58, %61 : vector<128x128xf32>
      %c0_40 = arith.constant 0 : index
      %c256_41 = arith.constant 256 : index
      %63 = vector.load %arg11[%c0_40, %c256_41] : memref<128x384xf32, #tpu.memory_space<vmem>>, vector<128x128xf32>
      tpu.vector_store %arg11[%c0_40, %c256_41], %62 {strides = array<i32>} : memref<128x384xf32, #tpu.memory_space<vmem>>, vector<128x128xf32>,
      %c1_42 = arith.constant 1 : index
      %c0_43 = arith.constant 0 : index
      %c0_44 = arith.constant 0 : index
      %64 = vector.load %arg10[%c1_42, %c0_43, %c0_44] : memref<3x128x128xf32, #tpu.memory_space<vmem>>, vector<1x128x128xf32>
      %65 = vector.shape_cast %64 : vector<1x128x128xf32> to vector<128x128xf32>
      %66 = vector.shape_cast %19 : vector<128x128xf32> to vector<1x128x128xf32>
      tpu.vector_store %arg10[%c1_42, %c0_43, %c0_44], %66 {strides = array<i32>} : memref<3x128x128xf32, #tpu.memory_space<vmem>>, vector<1x128x128xf32>,
    } else {
    }
    %c2_i32_34 = arith.constant 2 : i32
    %52 = arith.cmpi eq, %45, %c2_i32_34 : i32
    %53 = arith.extui %52 : i1 to i32
    %c0_i32_35 = arith.constant 0 : i32
    %54 = arith.cmpi ne, %53, %c0_i32_35 : i32
    scf.if %54 {
      %c0_37 = arith.constant 0 : index
      %c256 = arith.constant 256 : index
      %58 = vector.load %arg11[%c0_37, %c256] : memref<128x384xf32, #tpu.memory_space<vmem>>, vector<128x128xf32>
      %c2 = arith.constant 2 : index
      %c0_38 = arith.constant 0 : index
      %c0_39 = arith.constant 0 : index
      %59 = vector.load %arg10[%c2, %c0_38, %c0_39] : memref<3x128x128xf32, #tpu.memory_space<vmem>>, vector<1x128x128xf32>
      %60 = vector.shape_cast %59 : vector<1x128x128xf32> to vector<128x128xf32>
      %61 = arith.subf %19, %60 : vector<128x128xf32>
      %62 = arith.addf %58, %61 : vector<128x128xf32>
      %c0_40 = arith.constant 0 : index
      %c256_41 = arith.constant 256 : index
      %63 = vector.load %arg11[%c0_40, %c256_41] : memref<128x384xf32, #tpu.memory_space<vmem>>, vector<128x128xf32>
      tpu.vector_store %arg11[%c0_40, %c256_41], %62 {strides = array<i32>} : memref<128x384xf32, #tpu.memory_space<vmem>>, vector<128x128xf32>,
      %c2_42 = arith.constant 2 : index
      %c0_43 = arith.constant 0 : index
      %c0_44 = arith.constant 0 : index
      %64 = vector.load %arg10[%c2_42, %c0_43, %c0_44] : memref<3x128x128xf32, #tpu.memory_space<vmem>>, vector<1x128x128xf32>
      %65 = vector.shape_cast %64 : vector<1x128x128xf32> to vector<128x128xf32>
      %66 = vector.shape_cast %19 : vector<128x128xf32> to vector<1x128x128xf32>
      tpu.vector_store %arg10[%c2_42, %c0_43, %c0_44], %66 {strides = array<i32>} : memref<3x128x128xf32, #tpu.memory_space<vmem>>, vector<1x128x128xf32>,
    } else {
    }
    %c5_i32 = arith.constant 5 : i32
    %55 = arith.cmpi eq, %arg1, %c5_i32 : i32
    %56 = arith.extui %55 : i1 to i32
    %c0_i32_36 = arith.constant 0 : i32
    %57 = arith.cmpi ne, %56, %c0_i32_36 : i32
    scf.if %57 {
      %c0_37 = arith.constant 0 : index
      %c0_38 = arith.constant 0 : index
      %58 = vector.load %arg7[%c0_37, %c0_38] : memref<128x128xf32, #tpu.memory_space<vmem>>, vector<128x128xf32>
      tpu.vector_store %arg7[%c0_37, %c0_38], %11 {strides = array<i32>} : memref<128x128xf32, #tpu.memory_space<vmem>>, vector<128x128xf32>,
      %c0_39 = arith.constant 0 : index
      %c0_40 = arith.constant 0 : index
      %59 = vector.load %arg8[%c0_39, %c0_40] : memref<128x128xf32, #tpu.memory_space<vmem>>, vector<128x128xf32>
      tpu.vector_store %arg8[%c0_39, %c0_40], %19 {strides = array<i32>} : memref<128x128xf32, #tpu.memory_space<vmem>>, vector<128x128xf32>,
    } else {
    }
    return
  }
  func.func @transform_0(%arg0: i32, %arg1: i32) -> (i32, i32, i32) {
    %c0_i32 = arith.constant 0 : i32
    %c0_i32_0 = arith.constant 0 : i32
    return %arg1, %arg0, %c0_i32 : i32, i32, i32
  }
  func.func @transform_1(%arg0: i32, %arg1: i32) -> (i32, i32) {
    %c0_i32 = arith.constant 0 : i32
    %c0_i32_0 = arith.constant 0 : i32
    %c0_i32_1 = arith.constant 0 : i32
    return %c0_i32, %c0_i32_0 : i32, i32
  }
  func.func @transform_2(%arg0: i32, %arg1: i32) -> (i32, i32) {
    %c0_i32 = arith.constant 0 : i32
    %c0_i32_0 = arith.constant 0 : i32
    %c0_i32_1 = arith.constant 0 : i32
    return %c0_i32, %c0_i32_0 : i32, i32
  }
  func.func @transform_3(%arg0: i32, %arg1: i32) -> (i32, i32) {
    %c0_i32 = arith.constant 0 : i32
    %c0_i32_0 = arith.constant 0 : i32
    %c0_i32_1 = arith.constant 0 : i32
    return %c0_i32, %c0_i32_0 : i32, i32
  }
  func.func @transform_4(%arg0: i32, %arg1: i32) -> (i32, i32) {
    %c0_i32 = arith.constant 0 : i32
    %c0_i32_0 = arith.constant 0 : i32
    %c0_i32_1 = arith.constant 0 : i32
    return %c0_i32, %c0_i32_0 : i32, i32
  }
  func.func @transform_5(%arg0: i32, %arg1: i32) -> (i32, i32) {
    %c0_i32 = arith.constant 0 : i32
    %c0_i32_0 = arith.constant 0 : i32
    return %arg0, %c0_i32 : i32, i32
  }
  func.func @transform_6(%arg0: i32, %arg1: i32) -> (i32, i32) {
    %c0_i32 = arith.constant 0 : i32
    %c0_i32_0 = arith.constant 0 : i32
    return %arg0, %c0_i32 : i32, i32
  }
}

</mosaic_0001>

<bundles_post_ra>
// kernel: tpu_custom_call.1
= control target key start
LH: loop header
LB: loop body
LE: loop exit
PB: predicated region body
PF: predicated region fallthrough
CT: control target
= control target key end

     0   :  { %12 = vsyncpa [#allocation6], 0  ;;  %s3051_s0 = inlined_call_operand.hbm [shape: f32[6,128,128], index: 0, kind: input, shape index: {}]   ;;  %s3052_s1 = inlined_call_operand.hbm [shape: f32[128,128], index: 1, kind: input, shape index: {}]   ;;  %s3053_s2 = inlined_call_operand.vmem [shape: f32[1,128], index: 2, kind: input, shape index: {}]   ;;  %s3054_s3 = inlined_call_operand.hbm [shape: f32[384,128], index: 3, kind: input, shape index: {}]   ;;  %s3055_s4 = inlined_call_operand.vmem [shape: f32[1,128], index: 4, kind: input, shape index: {}]   ;;  %s3056_s5 = inlined_call_operand.hbm [shape: f32[128,128], index: 5, kind: output, shape index: {0}]   ;;  %s3057_s6 = inlined_call_operand.hbm [shape: f32[128,128], index: 6, kind: output, shape index: {1}]  }
   0x1   :  { %14 = vsyncpa [#allocation6 + $0x1], 0 }
   0x2   :  { %15 = vsyncpa [#allocation9], 0 }
   0x3   :  { %16 = vsyncpa [#allocation7], 0 }
   0x4   :  { %17 = vsyncpa [#allocation13], 0  ;;  %s2417_s21 = smov 0   ;;  %s2419_s22 = smov 0  }
   0x5   :  { %s2421_s23 = smov 0   ;;  %s2423_s24 = smov 0  }
   0x6   :  { %s2425_s25 = smov 0   ;;  %s2427_s26 = smov 0  }
   0x7 LB: > { %s3058_s27 = sadd.s32 4294967295, %s2370_s26   ;;  %p57_p0 = scmp.ne.s32.totalorder %s2354_s22, %s2350_s21  ;;  %s2370_s26 = sphi %s2427_s26, %s23_s26   ;;  %s2366_s25 = sphi %s2425_s25, %s3072_s25   ;;  %s2362_s24 = sphi %s2423_s24, %s3071_s24   ;;  %s2358_s23 = sphi %s2421_s23, %s3070_s23   ;;  %s2354_s22 = sphi %s2419_s22, %s3069_s22   ;;  %s2350_s21 = sphi %s2417_s21, %s3068_s21  }
   0x8   : > { %p2449_p1 = scmp.eq.s32.totalorder %s3058_s27, 0  ;;  %p1761_p2 = scmp.ge.s32.totalorder %s2370_s26, 1 }
   0x9   : > { %p204_p3 = scmp.lt.s32.totalorder %s2370_s26, 7  ;;  %s2372_s7 = smov [#allocation8]  }
   0xa   : > { %p2457_p4 = por %p2449_p1, %p57_p0  ;;  %s216_s8 = sshll.u32 %s2372_s7, 4  ;;  %s217_s8 = int_to_ptr.vmem [resolvable:$true] %s216_s8 }
   0xb   : > { %p2461_p5 = pnand %p1761_p2, %p204_p3  ;;  %s2373_s10 = smov [#allocation10]  }
   0xc   : > { %s232_s11 = sshll.u32 %s2373_s10, 4  ;;  %s2191_s12 = scalar_lea.vmem %s217_s8, 2048  ;;  %s233_s11 = int_to_ptr.vmem [resolvable:$true] %s232_s11 }
   0xd   : > { %p2068_p6 = pneg %p2461_p5  ;;  %p2192_p9 = scmp.ne.s32.totalorder %s217_s8, %s2191_s12 }
   0xe   : > { %p2199_p12 = scmp.lt.s32.totalorder %s217_s8, %s217_s8  ;;  %p2200_p13 = scmp.lt.s32.totalorder %s2191_s12, %s2191_s12 }
   0xf   : > { %p2469_p7 = pnand %p2068_p6, %p2449_p1 }
  0x10   : > { %p2201_p0 = por %p2200_p13, %p2199_p12 }
  0x11   : > { %p2182_p8 = pneg %p2469_p7 }
  0x13   : > { %p2194_p10 = pnand %p2192_p9, %p2182_p8 }
  0x15   : > { %p2195_p11 = pneg %p2194_p10 }
  0x17   : > { %p2202_p2 = pnand %p2201_p0, %p2195_p11 }
  0x19   : > { %2205 = shalt.err (!%p2202_p2)
}
  0x1a   : > { %s3059_s13 = smov 128   ;;  %s2375_s14 = smov 8  }
  0x1b   : > { %2071 = dma.hbm_to_vmem [thread:$0]  (!%p2469_p7), %s3052_s1, 2048, %s217_s8, [#allocation9], %s3059_s13, %s3059_s13, %s2375_s14  }
  0x1c   : > { %s2217_s17 = scalar_lea.vmem %s233_s11, 6144  ;;  %p2225_p10 = scmp.lt.s32.totalorder %s233_s11, %s233_s11 }
  0x1d   : > { %p2218_p3 = scmp.ne.s32.totalorder %s233_s11, %s2217_s17  ;;  %p2226_p11 = scmp.lt.s32.totalorder %s2217_s17, %s2217_s17 }
  0x1f   : > { %p2220_p6 = pnand %p2218_p3, %p2182_p8  ;;  %p2227_p12 = por %p2226_p11, %p2225_p10 }
  0x21   : > { %p2221_p9 = pneg %p2220_p6 }
  0x23   : > { %p2228_p13 = pnand %p2227_p12, %p2221_p9 }
  0x25   : > { %2231 = shalt.err (!%p2228_p13)
}
  0x26   : > { %2074 = dma.hbm_to_vmem [thread:$0]  (!%p2469_p7), %s3054_s3, 6144, %s233_s11, [#allocation9], %s3059_s13, %s3059_s13, %s2375_s14  }
  0x27   : > { %s32_s20 = sadd.s32 1, %s2366_s25  ;;  %s44_s21 = sadd.s32 1, %s2358_s23 }
  0x28   : > { %p33_p8 = scmp.ge.s32.totalorder %s32_s20, 6  ;;  %p51_p0 = scmp.ne.s32.totalorder %s2358_s23, %s2354_s22 }
  0x29   : > { %p52_p2 = scmp.eq.s32.totalorder %s2370_s26, 0  ;;  %p2081_p3 = scmp.lt.s32.totalorder %s2370_s26, 6 }
  0x2a   : > { %s3074_s20 = smov (%p33_p8, %s32_s20), 0  ;;  %s249_s7 = sand.u32 1, %s2358_s23  }
  0x2b   : > { %p53_p6 = por %p52_p2, %p51_p0  ;;  %s39_s8 = ssub.s32 %s2366_s25, %s3074_s20 }
  0x2c   : > { %p42_p9 = scmp.eq.s32.totalorder %s39_s8, 0  ;;  %s1765_s9 = sshll.u32 %s249_s7, 7 }
  0x2d   : > { %s1793_s10 = sshll.u32 %s2366_s25, 11  ;;  %s253_s17 = scalar_lea.vmem [#allocation5], %s1765_s9 }
  0x2e   : > { %s2510_s12 = scalar_select %p42_p9, %s2358_s23, %s44_s21  }
  0x2f   : > { %s261_s16 = scalar_lea.hbm %s3051_s0, %s1793_s10  ;;  %s262_s18 = sshll.u32 %s253_s17, 4  ;;  %s263_s18 = int_to_ptr.vmem [resolvable:$true] %s262_s18 }
  0x30   : > { %p2517_p7 = pnand %p2081_p3, %p53_p6  ;;  %s250_s27 = scalar_lea.sflag [#allocation6], %s249_s7 }
  0x31   : > { %s2245_s8 = scalar_lea.vmem %s263_s18, 2048  ;;  %s2376_s21 = smov [#allocation5]  }
  0x32   : > { %p2234_p10 = pneg %p2517_p7  ;;  %p2246_p11 = scmp.ne.s32.totalorder %s263_s18, %s2245_s8 }
  0x33   : > { %s2250_s13 = sshll.u32 %s2376_s21, 4  ;;  %s2251_s13 = int_to_ptr.vmem [resolvable:$false] %s2250_s13 }
  0x34   : > { %p2248_p12 = pnand %p2246_p11, %p2234_p10  ;;  %s2252_s10 = scalar_lea.vmem %s2251_s13, 4096 }
  0x35   : > { %p2253_p8 = scmp.lt.s32.totalorder %s263_s18, %s2251_s13  ;;  %p2254_p0 = scmp.lt.s32.totalorder %s2252_s10, %s2245_s8 }
  0x36   : > { %p2249_p13 = pneg %p2248_p12 }
  0x37   : > { %p2255_p2 = por %p2254_p0, %p2253_p8 }
  0x39   : > { %p2256_p9 = pnand %p2255_p2, %p2249_p13 }
  0x3b   : > { %2259 = shalt.err (!%p2256_p9)
}
  0x3c   : > { %s3065_s9 = smov 128   ;;  %274 = sbr.rel (%p2461_p5) target bundleno = 832 (0x340), region = 40 }
  0x3d   : > { %2078 = dma.hbm_to_vmem [thread:$0]  (!%p2517_p7), %s261_s16, 2048, %s263_s18, %s250_s27, %s3065_s9, %s3065_s9, %s2375_s14  }
  0x3e   : > { %s276_s7 = sand.u32 (!%p2461_p5), 1, %s2354_s22  }
  0x3f   : > { %s1769_s15 = sshll.u32 (!%p2461_p5), %s276_s7, 7  ;;  %s277_s11 = scalar_lea.sflag (!%p2461_p5), [#allocation6], %s276_s7 }
  0x40   : > { %s2531_s17 = scalar_lea.vmem (!%p2461_p5), [#allocation5], %s1769_s15 }
  0x41   : > { %2333 = dma.done.wait (%p2457_p4), %s277_s11, 2048  }
  0x42   : > { %2335 = vsyncadd (%p2457_p4), %s277_s11, 4294965248 }
  0x43   : > { %2337 = dma.done.wait (%p2449_p1), [#allocation9], 8192  }
  0x44   : > { %2339 = vsyncadd (%p2449_p1), [#allocation9], 4294959104  ;;  %p1772_p5 = scmp.ne.s32.totalorder %s2362_s24, 0 }
  0x46   : > { %318 = sbr.rel (%p1772_p5) target bundleno = 132 (0x84), region = 56 }
  0x4b   : > { %v2377_v0 = vmov 0.0  }
  0x4c   : > { %319 = vst [vmem:[#allocation2 + $0xb0] sm:$0xff] %v2377_v0  ;;  %320 = vst [vmem:[#allocation2] sm:$0xff] %v2377_v0 }
  0x4d   : > { %321 = vst [vmem:[#allocation2 + $0xd8] sm:$0xff] %v2377_v0  ;;  %322 = vst [vmem:[#allocation2 + $0x18] sm:$0xff] %v2377_v0 }
  0x4e   : > { %323 = vst [vmem:[#allocation2 + $0x50] sm:$0xff] %v2377_v0  ;;  %324 = vst [vmem:[#allocation2 + $0x68] sm:$0xff] %v2377_v0 }
  0x4f   : > { %325 = vst [vmem:[#allocation2 + $0x30] sm:$0xff] %v2377_v0  ;;  %326 = vst [vmem:[#allocation2 + $0x48] sm:$0xff] %v2377_v0 }
  0x50   : > { %327 = vst [vmem:[#allocation2 + $0x80] sm:$0xff] %v2377_v0  ;;  %328 = vst [vmem:[#allocation2 + $0x88] sm:$0xff] %v2377_v0 }
  0x51   : > { %329 = vst [vmem:[#allocation2 + $0xe8] sm:$0xff] %v2377_v0  ;;  %330 = vst [vmem:[#allocation2 + $0xb8] sm:$0xff] %v2377_v0 }
  0x52   : > { %331 = vst [vmem:[#allocation2 + $0x60] sm:$0xff] %v2377_v0  ;;  %332 = vst [vmem:[#allocation2 + $0xf0] sm:$0xff] %v2377_v0 }
  0x53   : > { %333 = vst [vmem:[#allocation2 + $0x8] sm:$0xff] %v2377_v0  ;;  %334 = vst [vmem:[#allocation2 + $0x78] sm:$0xff] %v2377_v0 }
  0x54   : > { %335 = vst [vmem:[#allocation2 + $0x38] sm:$0xff] %v2377_v0  ;;  %336 = vst [vmem:[#allocation2 + $0x58] sm:$0xff] %v2377_v0 }
  0x55   : > { %337 = vst [vmem:[#allocation2 + $0x40] sm:$0xff] %v2377_v0  ;;  %338 = vst [vmem:[#allocation2 + $0xc8] sm:$0xff] %v2377_v0 }
  0x56   : > { %339 = vst [vmem:[#allocation2 + $0xe0] sm:$0xff] %v2377_v0  ;;  %340 = vst [vmem:[#allocation2 + $0x90] sm:$0xff] %v2377_v0 }
  0x57   : > { %341 = vst [vmem:[#allocation2 + $0x70] sm:$0xff] %v2377_v0  ;;  %342 = vst [vmem:[#allocation2 + $0xc0] sm:$0xff] %v2377_v0 }
  0x58   : > { %343 = vst [vmem:[#allocation2 + $0xa8] sm:$0xff] %v2377_v0  ;;  %344 = vst [vmem:[#allocation2 + $0xd0] sm:$0xff] %v2377_v0 }
  0x59   : > { %345 = vst [vmem:[#allocation2 + $0x10] sm:$0xff] %v2377_v0  ;;  %346 = vst [vmem:[#allocation2 + $0x28] sm:$0xff] %v2377_v0 }
  0x5a   : > { %347 = vst [vmem:[#allocation2 + $0xa0] sm:$0xff] %v2377_v0  ;;  %348 = vst [vmem:[#allocation2 + $0xf8] sm:$0xff] %v2377_v0 }
  0x5b   : > { %349 = vst [vmem:[#allocation2 + $0x20] sm:$0xff] %v2377_v0  ;;  %350 = vst [vmem:[#allocation2 + $0x98] sm:$0xff] %v2377_v0 }
  0x5c   : > { %351 = vst [vmem:[#allocation3 + $0x80] sm:$0xff] %v2377_v0  ;;  %352 = vst [vmem:[#allocation3 + $0xc8] sm:$0xff] %v2377_v0 }
  0x5d   : > { %353 = vst [vmem:[#allocation3 + $0x170] sm:$0xff] %v2377_v0  ;;  %354 = vst [vmem:[#allocation3 + $0xc0] sm:$0xff] %v2377_v0 }
  0x5e   : > { %355 = vst [vmem:[#allocation3 + $0x148] sm:$0xff] %v2377_v0  ;;  %356 = vst [vmem:[#allocation3] sm:$0xff] %v2377_v0 }
  0x5f   : > { %357 = vst [vmem:[#allocation3 + $0xa8] sm:$0xff] %v2377_v0  ;;  %358 = vst [vmem:[#allocation3 + $0xb8] sm:$0xff] %v2377_v0 }
  0x60   : > { %359 = vst [vmem:[#allocation3 + $0xf0] sm:$0xff] %v2377_v0  ;;  %360 = vst [vmem:[#allocation3 + $0x100] sm:$0xff] %v2377_v0 }
  0x61   : > { %361 = vst [vmem:[#allocation3 + $0x8] sm:$0xff] %v2377_v0  ;;  %362 = vst [vmem:[#allocation3 + $0x20] sm:$0xff] %v2377_v0 }
  0x62   : > { %363 = vst [vmem:[#allocation3 + $0x68] sm:$0xff] %v2377_v0  ;;  %364 = vst [vmem:[#allocation3 + $0xd0] sm:$0xff] %v2377_v0 }
  0x63   : > { %365 = vst [vmem:[#allocation3 + $0x158] sm:$0xff] %v2377_v0  ;;  %366 = vst [vmem:[#allocation3 + $0x48] sm:$0xff] %v2377_v0 }
  0x64   : > { %367 = vst [vmem:[#allocation3 + $0x38] sm:$0xff] %v2377_v0  ;;  %368 = vst [vmem:[#allocation3 + $0x40] sm:$0xff] %v2377_v0 }
  0x65   : > { %369 = vst [vmem:[#allocation3 + $0xe8] sm:$0xff] %v2377_v0  ;;  %370 = vst [vmem:[#allocation3 + $0x18] sm:$0xff] %v2377_v0 }
  0x66   : > { %371 = vst [vmem:[#allocation3 + $0x138] sm:$0xff] %v2377_v0  ;;  %372 = vst [vmem:[#allocation3 + $0xe0] sm:$0xff] %v2377_v0 }
  0x67   : > { %373 = vst [vmem:[#allocation3 + $0x150] sm:$0xff] %v2377_v0  ;;  %374 = vst [vmem:[#allocation3 + $0xa0] sm:$0xff] %v2377_v0 }
  0x68   : > { %375 = vst [vmem:[#allocation3 + $0x128] sm:$0xff] %v2377_v0  ;;  %376 = vst [vmem:[#allocation3 + $0x110] sm:$0xff] %v2377_v0 }
  0x69   : > { %377 = vst [vmem:[#allocation3 + $0x130] sm:$0xff] %v2377_v0  ;;  %378 = vst [vmem:[#allocation3 + $0x120] sm:$0xff] %v2377_v0 }
  0x6a   : > { %379 = vst [vmem:[#allocation3 + $0x90] sm:$0xff] %v2377_v0  ;;  %380 = vst [vmem:[#allocation3 + $0x88] sm:$0xff] %v2377_v0 }
  0x6b   : > { %381 = vst [vmem:[#allocation3 + $0xd8] sm:$0xff] %v2377_v0  ;;  %382 = vst [vmem:[#allocation3 + $0x50] sm:$0xff] %v2377_v0 }
  0x6c   : > { %383 = vst [vmem:[#allocation3 + $0x168] sm:$0xff] %v2377_v0  ;;  %384 = vst [vmem:[#allocation3 + $0x78] sm:$0xff] %v2377_v0 }
  0x6d   : > { %385 = vst [vmem:[#allocation3 + $0xf8] sm:$0xff] %v2377_v0  ;;  %386 = vst [vmem:[#allocation3 + $0x60] sm:$0xff] %v2377_v0 }
  0x6e   : > { %387 = vst [vmem:[#allocation3 + $0x28] sm:$0xff] %v2377_v0  ;;  %388 = vst [vmem:[#allocation3 + $0x118] sm:$0xff] %v2377_v0 }
  0x6f   : > { %389 = vst [vmem:[#allocation3 + $0xb0] sm:$0xff] %v2377_v0  ;;  %390 = vst [vmem:[#allocation3 + $0x10] sm:$0xff] %v2377_v0 }
  0x70   : > { %391 = vst [vmem:[#allocation3 + $0x108] sm:$0xff] %v2377_v0  ;;  %392 = vst [vmem:[#allocation3 + $0x70] sm:$0xff] %v2377_v0 }
  0x71   : > { %393 = vst [vmem:[#allocation3 + $0x140] sm:$0xff] %v2377_v0  ;;  %394 = vst [vmem:[#allocation3 + $0x98] sm:$0xff] %v2377_v0 }
  0x72   : > { %395 = vst [vmem:[#allocation3 + $0x58] sm:$0xff] %v2377_v0  ;;  %396 = vst [vmem:[#allocation3 + $0x30] sm:$0xff] %v2377_v0 }
  0x73   : > { %397 = vst [vmem:[#allocation3 + $0x178] sm:$0xff] %v2377_v0  ;;  %398 = vst [vmem:[#allocation3 + $0x160] sm:$0xff] %v2377_v0 }
  0x74   : > { %400 = vst [vmem:[#allocation4 + $0x158] sm:$0xff] %v2377_v0  ;;  %401 = vst [vmem:[#allocation4 + $0x88] sm:$0xff] %v2377_v0 }
  0x75   : > { %403 = vst [vmem:[#allocation4 + $0xf8] sm:$0xff] %v2377_v0  ;;  %404 = vst [vmem:[#allocation4 + $0x168] sm:$0xff] %v2377_v0 }
  0x76   : > { %406 = vst [vmem:[#allocation4 + $0x100] sm:$0xff] %v2377_v0  ;;  %407 = vst [vmem:[#allocation4 + $0x8] sm:$0xff] %v2377_v0 }
  0x77   : > { %409 = vst [vmem:[#allocation4 + $0xc8] sm:$0xff] %v2377_v0  ;;  %410 = vst [vmem:[#allocation4 + $0x140] sm:$0xff] %v2377_v0 }
  0x78   : > { %412 = vst [vmem:[#allocation4 + $0x80] sm:$0xff] %v2377_v0  ;;  %413 = vst [vmem:[#allocation4 + $0x10] sm:$0xff] %v2377_v0 }
  0x79   : > { %415 = vst [vmem:[#allocation4 + $0x90] sm:$0xff] %v2377_v0  ;;  %416 = vst [vmem:[#allocation4 + $0x30] sm:$0xff] %v2377_v0 }
  0x7a   : > { %418 = vst [vmem:[#allocation4 + $0x40] sm:$0xff] %v2377_v0  ;;  %419 = vst [vmem:[#allocation4 + $0x160] sm:$0xff] %v2377_v0 }
  0x7b   : > { %421 = vst [vmem:[#allocation4 + $0xa0] sm:$0xff] %v2377_v0  ;;  %422 = vst [vmem:[#allocation4 + $0xa8] sm:$0xff] %v2377_v0 }
  0x7c   : > { %424 = vst [vmem:[#allocation4 + $0x170] sm:$0xff] %v2377_v0  ;;  %425 = vst [vmem:[#allocation4 + $0x118] sm:$0xff] %v2377_v0 }
  0x7d   : > { %427 = vst [vmem:[#allocation4 + $0x98] sm:$0xff] %v2377_v0  ;;  %428 = vst [vmem:[#allocation4 + $0x138] sm:$0xff] %v2377_v0 }
  0x7e   : > { %430 = vst [vmem:[#allocation4 + $0x130] sm:$0xff] %v2377_v0  ;;  %431 = vst [vmem:[#allocation4 + $0x58] sm:$0xff] %v2377_v0 }
  0x7f   : > { %433 = vst [vmem:[#allocation4 + $0x150] sm:$0xff] %v2377_v0  ;;  %434 = vst [vmem:[#allocation4 + $0xf0] sm:$0xff] %v2377_v0 }
  0x80   : > { %436 = vst [vmem:[#allocation4 + $0x108] sm:$0xff] %v2377_v0  ;;  %437 = vst [vmem:[#allocation4 + $0x70] sm:$0xff] %v2377_v0 }
  0x81   : > { %439 = vst [vmem:[#allocation4 + $0xb0] sm:$0xff] %v2377_v0  ;;  %440 = vst [vmem:[#allocation4 + $0xc0] sm:$0xff] %v2377_v0 }
  0x82   : > { %442 = vst [vmem:[#allocation4 + $0x178] sm:$0xff] %v2377_v0  ;;  %443 = vst [vmem:[#allocation4 + $0x28] sm:$0xff] %v2377_v0 }
  0x83   : > { %445 = vst [vmem:[#allocation4 + $0x148] sm:$0xff] %v2377_v0  ;;  %446 = vst [vmem:[#allocation4 + $0x128] sm:$0xff] %v2377_v0 }
  0x84 PF: > { %v478_v1 = vld [vmem:[#allocation8 + $0x78] sm:$0xff]  ;;  %v477_v2 = vld [vmem:[#allocation8 + $0x70] sm:$0xff]  ;;  %v476_v3 = vld [vmem:[#allocation8 + $0x68] sm:$0xff]  ;;  %s1073_s29 = ssub.s32 0, %s2362_s24  ;;  %p1072_p1 = scmp.lt.s32.totalorder %s2362_s24, 0 }
  0x85   : > { %1938 = vmatprep.subr.mxu0 %v478_v1  ;;  %v475_v4 = vld [vmem:[#allocation8 + $0x60] sm:$0xff]  ;;  %v474_v6 = vld [vmem:[#allocation8 + $0x58] sm:$0xff]  ;;  %v473_v7 = vld [vmem:[#allocation8 + $0x50] sm:$0xff]  ;;  %s2741_s30 = smin.u32 %s2362_s24, %s1073_s29 }
  0x86   : > { %1939 = vmatpush3.msra.mxu0 %v478_v1  ;;  %v447_v5 = vld [vmem:[%s2531_s17] sm:$0xff]  ;;  %v472_v8 = vld [vmem:[#allocation8 + $0x48] sm:$0xff]  ;;  %v742_v9 = vld [vmem:[#allocation10 + $0xf8] sm:$0xff]  ;;  %s1075_s13 = sand.u32 1, %s2741_s30  }
  0x87   : > { %1940 = vmatprep.subr.mxu0 %v477_v2  ;;  %1970 = vmatprep.mubr.f32.mxu0 %v447_v5  ;;  %v726_v10 = vld [vmem:[#allocation10 + $0x78] sm:$0xff]  ;;  %v741_v11 = vld [vmem:[#allocation10 + $0xf0] sm:$0xff]  ;;  %v471_v13 = vld [vmem:[#allocation8 + $0x40] sm:$0xff]  ;;  %s1076_s14 = ssub.s32 0, %s1075_s13 }
  0x88   : > { %1941 = vmatpush3.msra.mxu0 %v477_v2  ;;  %1826 = vmatprep.subr.mxu1 %v742_v9  ;;  %v725_v12 = vld [vmem:[#allocation10 + $0x70] sm:$0xff]  ;;  %v740_v14 = vld [vmem:[#allocation10 + $0xe8] sm:$0xff]  ;;  %v470_v16 = vld [vmem:[#allocation8 + $0x38] sm:$0xff]  ;;  %s3076_s14 = smov (!%p1072_p1, %s1076_s14), %s1075_s13 }
  0x89   : > { %1942 = vmatprep.subr.mxu0 %v476_v3  ;;  %1827 = vmatpush3.msra.mxu1 %v726_v10  ;;  %v724_v15 = vld [vmem:[#allocation10 + $0x68] sm:$0xff]  ;;  %v739_v17 = vld [vmem:[#allocation10 + $0xe0] sm:$0xff]  ;;  %v469_v19 = vld [vmem:[#allocation8 + $0x30] sm:$0xff]  ;;  %p1777_p4 = scmp.lt.s32.totalorder %s3076_s14, 0  ;;  %s1082_s16 = sadd.s32 2, %s3076_s14 }
  0x8a   : > { %1943 = vmatpush3.msra.mxu0 %v476_v3  ;;  %1828 = vmatprep.subr.mxu1 %v741_v11  ;;  %v723_v18 = vld [vmem:[#allocation10 + $0x60] sm:$0xff]  ;;  %v738_v20 = vld [vmem:[#allocation10 + $0xd8] sm:$0xff]  ;;  %v468_v22 = vld [vmem:[#allocation8 + $0x28] sm:$0xff] }
  0x8b   : > { %1944 = vmatprep.subr.mxu0 %v475_v4  ;;  %1829 = vmatpush3.msra.mxu1 %v725_v12  ;;  %v722_v21 = vld [vmem:[#allocation10 + $0x58] sm:$0xff]  ;;  %v737_v23 = vld [vmem:[#allocation10 + $0xd0] sm:$0xff]  ;;  %v467_v25 = vld [vmem:[#allocation8 + $0x20] sm:$0xff]  ;;  %s3078_s16 = smov (!%p1777_p4, %s1082_s16), %s3076_s14 }
  0x8c   : > { %1945 = vmatpush3.msra.mxu0 %v475_v4  ;;  %1830 = vmatprep.subr.mxu1 %v740_v14  ;;  %v721_v24 = vld [vmem:[#allocation10 + $0x50] sm:$0xff]  ;;  %v736_v26 = vld [vmem:[#allocation10 + $0xc8] sm:$0xff]  ;;  %v466_v28 = vld [vmem:[#allocation8 + $0x18] sm:$0xff]  ;;  %p1778_p3 = scmp.ne.s32.totalorder %s3078_s16, 0 }
  0x8d   : > { %1946 = vmatprep.subr.mxu0 %v474_v6  ;;  %1831 = vmatpush3.msra.mxu1 %v724_v15  ;;  %v720_v27 = vld [vmem:[#allocation10 + $0x48] sm:$0xff]  ;;  %v735_v29 = vld [vmem:[#allocation10 + $0xc0] sm:$0xff]  ;;  %v465_v31 = vld [vmem:[#allocation8 + $0x10] sm:$0xff] }
  0x8e   : > { %1947 = vmatpush3.msra.mxu0 %v474_v6  ;;  %1832 = vmatprep.subr.mxu1 %v739_v17  ;;  %v719_v30 = vld [vmem:[#allocation10 + $0x40] sm:$0xff]  ;;  %v734_v32 = vld [vmem:[#allocation10 + $0xb8] sm:$0xff]  ;;  %v464_v33 = vld [vmem:[#allocation8 + $0x8] sm:$0xff] }
  0x8f   : > { %1948 = vmatprep.subr.mxu0 %v473_v7  ;;  %1833 = vmatpush3.msra.mxu1 %v723_v18  ;;  %v463_v34 = vld [vmem:[#allocation8] sm:$0xff]  ;;  %v448_v35 = vld [vmem:[%s2531_s17 + $0x8] sm:$0xff]  ;;  %v758_v36 = vld [vmem:[#allocation10 + $0x178] sm:$0xff] }
  0x90   : > { %1949 = vmatpush3.msra.mxu0 %v473_v7  ;;  %1834 = vmatprep.subr.mxu1 %v738_v20  ;;  %v449_v37 = vld [vmem:[%s2531_s17 + $0x10] sm:$0xff]  ;;  %v450_v39 = vld [vmem:[%s2531_s17 + $0x18] sm:$0xff]  ;;  %v756_v40 = vld [vmem:[#allocation10 + $0x168] sm:$0xff] }
  0x91   : > { %1950 = vmatprep.subr.mxu0 %v472_v8  ;;  %1835 = vmatpush3.msra.mxu1 %v722_v21  ;;  %v757_v38 = vld [vmem:[#allocation10 + $0x170] sm:$0xff]  ;;  %v451_v41 = vld [vmem:[%s2531_s17 + $0x20] sm:$0xff]  ;;  %v452_v43 = vld [vmem:[%s2531_s17 + $0x28] sm:$0xff] }
  0x92   : > { %1951 = vmatpush3.msra.mxu0 %v472_v8  ;;  %1836 = vmatprep.subr.mxu1 %v737_v23  ;;  %v755_v42 = vld [vmem:[#allocation10 + $0x160] sm:$0xff]  ;;  %v754_v44 = vld [vmem:[#allocation10 + $0x158] sm:$0xff]  ;;  %v453_v45 = vld [vmem:[%s2531_s17 + $0x30] sm:$0xff] }
  0x93   : > { %1952 = vmatprep.subr.mxu0 %v471_v13  ;;  %1837 = vmatpush3.msra.mxu1 %v721_v24  ;;  %v753_v46 = vld [vmem:[#allocation10 + $0x150] sm:$0xff]  ;;  %v454_v47 = vld [vmem:[%s2531_s17 + $0x38] sm:$0xff]  ;;  %v752_v48 = vld [vmem:[#allocation10 + $0x148] sm:$0xff] }
  0x94   : > { %1953 = vmatpush3.msra.mxu0 %v471_v13  ;;  %1838 = vmatprep.subr.mxu1 %v736_v26  ;;  %v455_v49 = vld [vmem:[%s2531_s17 + $0x40] sm:$0xff]  ;;  %v456_v50 = vld [vmem:[%s2531_s17 + $0x48] sm:$0xff]  ;;  %v457_v51 = vld [vmem:[%s2531_s17 + $0x50] sm:$0xff] }
  0x95   : > { %1954 = vmatprep.subr.mxu0 %v470_v16  ;;  %1839 = vmatpush3.msra.mxu1 %v720_v27  ;;  %v458_v52 = vld [vmem:[%s2531_s17 + $0x58] sm:$0xff]  ;;  %v459_v53 = vld [vmem:[%s2531_s17 + $0x60] sm:$0xff]  ;;  %v460_v54 = vld [vmem:[%s2531_s17 + $0x68] sm:$0xff] }
  0x96   : > { %1955 = vmatpush3.msra.mxu0 %v470_v16  ;;  %1840 = vmatprep.subr.mxu1 %v735_v29  ;;  %v461_v55 = vld [vmem:[%s2531_s17 + $0x70] sm:$0xff]  ;;  %v462_v56 = vld [vmem:[%s2531_s17 + $0x78] sm:$0xff]  ;;  %v751_v59 = vld [vmem:[#allocation10 + $0x140] sm:$0xff] }
  0x97   : > { %1956 = vmatprep.subr.mxu0 %v469_v19  ;;  %1841 = vmatpush3.msra.mxu1 %v719_v30  ;;  %v718_v57 = vld [vmem:[#allocation10 + $0x38] sm:$0xff]  ;;  %v733_v58 = vld [vmem:[#allocation10 + $0xb0] sm:$0xff]  ;;  %v732_v61 = vld [vmem:[#allocation10 + $0xa8] sm:$0xff] }
  0x98   : > { %1957 = vmatpush3.msra.mxu0 %v469_v19  ;;  %1842 = vmatprep.subr.mxu1 %v734_v32  ;;  %v717_v60 = vld [vmem:[#allocation10 + $0x30] sm:$0xff]  ;;  %v750_v62 = vld [vmem:[#allocation10 + $0x138] sm:$0xff]  ;;  %v716_v63 = vld [vmem:[#allocation10 + $0x28] sm:$0xff] }
  0x99   : > { %1958 = vmatprep.subr.mxu0 %v468_v22  ;;  %1843 = vmatpush3.msra.mxu1 %v718_v57  ;;  %v731_v0 = vld [vmem:[#allocation10 + $0xa0] sm:$0xff]  ;;  %v749_v1 = vld [vmem:[#allocation10 + $0x130] sm:$0xff]  ;;  %v730_v3 = vld [vmem:[#allocation10 + $0x98] sm:$0xff] }
  0x9a   : > { %1959 = vmatpush3.msra.mxu0 %v468_v22  ;;  %1844 = vmatprep.subr.mxu1 %v733_v58  ;;  %v715_v2 = vld [vmem:[#allocation10 + $0x20] sm:$0xff]  ;;  %v748_v4 = vld [vmem:[#allocation10 + $0x128] sm:$0xff]  ;;  %v714_v5 = vld [vmem:[#allocation10 + $0x18] sm:$0xff] }
  0x9b   : > { %1960 = vmatprep.subr.mxu0 %v467_v25  ;;  %1845 = vmatpush3.msra.mxu1 %v717_v60  ;;  %v729_v6 = vld [vmem:[#allocation10 + $0x90] sm:$0xff]  ;;  %v747_v7 = vld [vmem:[#allocation10 + $0x120] sm:$0xff]  ;;  %v728_v9 = vld [vmem:[#allocation10 + $0x88] sm:$0xff] }
  0x9c   : > { %1961 = vmatpush3.msra.mxu0 %v467_v25  ;;  %1846 = vmatprep.subr.mxu1 %v732_v61  ;;  %v713_v8 = vld [vmem:[#allocation10 + $0x10] sm:$0xff]  ;;  %v746_v10 = vld [vmem:[#allocation10 + $0x118] sm:$0xff]  ;;  %v712_v11 = vld [vmem:[#allocation10 + $0x8] sm:$0xff] }
  0x9d   : > { %1962 = vmatprep.subr.mxu0 %v466_v28  ;;  %1847 = vmatpush3.msra.mxu1 %v716_v63  ;;  %v727_v12 = vld [vmem:[#allocation10 + $0x80] sm:$0xff]  ;;  %v745_v13 = vld [vmem:[#allocation10 + $0x110] sm:$0xff]  ;;  %v664_v15 = vld [vmem:[#allocation4 + $0x158] sm:$0xff] }
  0x9e   : > { %1963 = vmatpush3.msra.mxu0 %v466_v28  ;;  %1848 = vmatprep.subr.mxu1 %v731_v0  ;;  %v711_v14 = vld [vmem:[#allocation10] sm:$0xff]  ;;  %v744_v16 = vld [vmem:[#allocation10 + $0x108] sm:$0xff]  ;;  %v677_v22 = vld [vmem:[#allocation4 + $0x10] sm:$0xff] }
  0x9f   : > { %1964 = vmatprep.subr.mxu0 %v465_v31  ;;  %1849 = vmatpush3.msra.mxu1 %v715_v2  ;;  %v743_v17 = vld [vmem:[#allocation10 + $0x100] sm:$0xff]  ;;  %v665_v18 = vld [vmem:[#allocation4 + $0x88] sm:$0xff]  ;;  %v680_v23 = vld [vmem:[#allocation4 + $0x30] sm:$0xff] }
  0xa0   : > { %1965 = vmatpush3.msra.mxu0 %v465_v31  ;;  %1850 = vmatprep.subr.mxu1 %v730_v3  ;;  %v668_v19 = vld [vmem:[#allocation4 + $0x168] sm:$0xff]  ;;  %v674_v21 = vld [vmem:[#allocation4 + $0x140] sm:$0xff]  ;;  %v689_v26 = vld [vmem:[#allocation4 + $0x118] sm:$0xff] }
  0xa1   : > { %1966 = vmatprep.subr.mxu0 %v464_v33  ;;  %1851 = vmatpush3.msra.mxu1 %v714_v5  ;;  %v671_v20 = vld [vmem:[#allocation4 + $0x8] sm:$0xff]  ;;  %v683_v24 = vld [vmem:[#allocation4 + $0x160] sm:$0xff]  ;;  %v692_v27 = vld [vmem:[#allocation4 + $0x138] sm:$0xff] }
  0xa2   : > { %1967 = vmatpush3.msra.mxu0 %v464_v33  ;;  %1852 = vmatprep.subr.mxu1 %v729_v6  ;;  %v686_v25 = vld [vmem:[#allocation4 + $0xa8] sm:$0xff]  ;;  %v695_v28 = vld [vmem:[#allocation4 + $0x58] sm:$0xff]  ;;  %v698_v29 = vld [vmem:[#allocation4 + $0xf0] sm:$0xff] }
  0xa3   : > { %1968 = vmatprep.subr.mxu0 %v463_v34  ;;  %1853 = vmatpush3.msra.mxu1 %v713_v8  ;;  %v701_v30 = vld [vmem:[#allocation4 + $0x70] sm:$0xff]  ;;  %v704_v31 = vld [vmem:[#allocation4 + $0xc0] sm:$0xff]  ;;  %v707_v32 = vld [vmem:[#allocation4 + $0x28] sm:$0xff] }
  0xa4   : > { %1969 = vmatpush3.msra.mxu0 %v463_v34  ;;  %1854 = vmatprep.subr.mxu1 %v728_v9  ;;  %v710_v33 = vld [vmem:[#allocation4 + $0x128] sm:$0xff]  ;;  %v2673_v34 = vld [vmem:[%s3053_s2] ss:$0 sm:$0xff]  ;;  %v679_v6 = vld [vmem:[#allocation4 + $0x90] sm:$0xff] }
  0xa5   : > { %1971 = vmatmul.mubr.f32.vlgmr.msra.gmra.mxu0 %v448_v35  ;;  %1994 = vmatprep.subr.mxu0 %v758_v36  ;;  %v673_v57 = vld [vmem:[#allocation4 + $0xc8] sm:$0xff]  ;;  %v676_v0 = vld [vmem:[#allocation4 + $0x80] sm:$0xff] }
  0xa6   : > { %1973 = vmatprep.mubr.f32.mxu0 %v449_v37  ;;  %1995 = vmatpush3.msra.mxu0 %v758_v36 }
  0xa7   : > { %1996 = vmatprep.subr.mxu0 %v757_v38  ;;  %1855 = vmatpush3.msra.mxu1 %v712_v11 }
  0xa8   : > { %1997 = vmatpush3.msra.mxu0 %v757_v38  ;;  %1856 = vmatprep.subr.mxu1 %v727_v12  ;;  %v682_v12 = vld [vmem:[#allocation4 + $0x40] sm:$0xff] }
  0xa9   : > { %1974 = vmatmul.mubr.f32.gmra.mxu0 %v450_v39  ;;  %1998 = vmatprep.subr.mxu0 %v756_v40 }
  0xaa   : > { %1976 = vmatprep.mubr.f32.mxu0 %v451_v41  ;;  %1999 = vmatpush3.msra.mxu0 %v756_v40 }
  0xab   : > { %2000 = vmatprep.subr.mxu0 %v755_v42  ;;  %1857 = vmatpush3.msra.mxu1 %v711_v14 }
  0xac   : > { %2001 = vmatpush3.msra.mxu0 %v755_v42  ;;  %830 = vmatprep.mubr.f32.mxu1 %v664_v15 }
  0xad   : > { %1977 = vmatmul.mubr.f32.gmra.mxu0 %v452_v43  ;;  %2002 = vmatprep.subr.mxu0 %v754_v44  ;;  %v667_v43 = vld [vmem:[#allocation4 + $0xf8] sm:$0xff] }
  0xae   : > { %1979 = vmatprep.mubr.f32.mxu0 %v453_v45  ;;  %2003 = vmatpush3.msra.mxu0 %v754_v44 }
  0xaf   : > { %2004 = vmatprep.subr.mxu0 %v753_v46 }
  0xb0   : > { %2005 = vmatpush3.msra.mxu0 %v753_v46 }
  0xb1   : > { %1980 = vmatmul.mubr.f32.gmra.mxu0 %v454_v47  ;;  %2006 = vmatprep.subr.mxu0 %v752_v48 }
  0xb2   : > { %1982 = vmatprep.mubr.f32.mxu0 %v455_v49  ;;  %2007 = vmatpush3.msra.mxu0 %v752_v48 }
  0xb3   : > { %2008 = vmatprep.subr.mxu0 %v751_v59 }
  0xb4   : > { %2009 = vmatpush3.msra.mxu0 %v751_v59 }
  0xb5   : > { %1983 = vmatmul.mubr.f32.gmra.mxu0 %v456_v50  ;;  %2010 = vmatprep.subr.mxu0 %v750_v62  ;;  %v670_v50 = vld [vmem:[#allocation4 + $0x100] sm:$0xff] }
  0xb6   : > { %1985 = vmatprep.mubr.f32.mxu0 %v457_v51  ;;  %2011 = vmatpush3.msra.mxu0 %v750_v62 }
  0xb7   : > { %2012 = vmatprep.subr.mxu0 %v749_v1 }
  0xb8   : > { %2013 = vmatpush3.msra.mxu0 %v749_v1 }
  0xb9   : > { %1986 = vmatmul.mubr.f32.gmra.mxu0 %v458_v52  ;;  %2014 = vmatprep.subr.mxu0 %v748_v4 }
  0xba   : > { %1988 = vmatprep.mubr.f32.mxu0 %v459_v53  ;;  %2015 = vmatpush3.msra.mxu0 %v748_v4 }
  0xbb   : > { %2016 = vmatprep.subr.mxu0 %v747_v7 }
  0xbc   : > { %2017 = vmatpush3.msra.mxu0 %v747_v7 }
  0xbd   : > { %1989 = vmatmul.mubr.f32.gmra.mxu0 %v460_v54  ;;  %2018 = vmatprep.subr.mxu0 %v746_v10 }
  0xbe   : > { %1991 = vmatprep.mubr.f32.mxu0 %v461_v55  ;;  %2019 = vmatpush3.msra.mxu0 %v746_v10 }
  0xbf   : > { %2020 = vmatprep.subr.mxu0 %v745_v13 }
  0xc0   : > { %2021 = vmatpush3.msra.mxu0 %v745_v13 }
  0xc1   : > { %1992 = vmatmul.mubr.f32.gmra.mxu0 %v462_v56  ;;  %2022 = vmatprep.subr.mxu0 %v744_v16 }
  0xc2   : > { %2023 = vmatpush3.msra.mxu0 %v744_v16  ;;  %2026 = vmatprep.mubr.f32.mxu0 %v665_v18 }
  0xc3   : > { %2024 = vmatprep.subr.mxu0 %v743_v17 }
  0xc4   : > { %2025 = vmatpush3.msra.mxu0 %v743_v17 }
  0xc5   : > { %2027 = vmatmul.mubr.f32.vlgmr.msra.gmra.mxu0 %v668_v19  ;;  %v685_v19 = vld [vmem:[#allocation4 + $0xa0] sm:$0xff] }
  0xc6   : > { %2029 = vmatprep.mubr.f32.mxu0 %v671_v20 }
  0xc9   : > { %2030 = vmatmul.mubr.f32.gmra.mxu0 %v674_v21 }
  0xca   : > { %2032 = vmatprep.mubr.f32.mxu0 %v677_v22 }
  0xcd   : > { %2033 = vmatmul.mubr.f32.gmra.mxu0 %v680_v23 }
  0xce   : > { %2035 = vmatprep.mubr.f32.mxu0 %v683_v24 }
  0xd1   : > { %2036 = vmatmul.mubr.f32.gmra.mxu0 %v686_v25  ;;  %v688_v25 = vld [vmem:[#allocation4 + $0x170] sm:$0xff] }
  0xd2   : > { %2038 = vmatprep.mubr.f32.mxu0 %v689_v26 }
  0xd5   : > { %2039 = vmatmul.mubr.f32.gmra.mxu0 %v692_v27  ;;  %v691_v27 = vld [vmem:[#allocation4 + $0x98] sm:$0xff] }
  0xd6   : > { %2041 = vmatprep.mubr.f32.mxu0 %v695_v28  ;;  %v694_v28 = vld [vmem:[#allocation4 + $0x130] sm:$0xff] }
  0xd9   : > { %2042 = vmatmul.mubr.f32.gmra.mxu0 %v698_v29  ;;  %v697_v29 = vld [vmem:[#allocation4 + $0x150] sm:$0xff] }
  0xda   : > { %2044 = vmatprep.mubr.f32.mxu0 %v701_v30  ;;  %v700_v30 = vld [vmem:[#allocation4 + $0x108] sm:$0xff] }
  0xdd   : > { %2045 = vmatmul.mubr.f32.gmra.mxu0 %v704_v31  ;;  %v703_v31 = vld [vmem:[#allocation4 + $0xb0] sm:$0xff] }
  0xde   : > { %2047 = vmatprep.mubr.f32.mxu0 %v707_v32  ;;  %v706_v32 = vld [vmem:[#allocation4 + $0x178] sm:$0xff] }
  0xe1   : > { %2048 = vmatmul.mubr.f32.gmra.mxu0 %v710_v33  ;;  %v709_v33 = vld [vmem:[#allocation4 + $0x148] sm:$0xff] }
 0x165   : > { %v1972_v35 = vpop.f32.mrf.mxu0 }
 0x166   : > { %v558_v36 = vadd.f32 %v1972_v35, %v2673_v34 }
 0x167   : > { %v552_v37 = vpop.f32.mrf.mxu0 }
 0x168   : > { %v2676_v38 = vmax.f32 %v558_v36, 0.0  ;;  %v553_v39 = vadd.f32 %v2673_v34, %v552_v37  ;;  %v2752_v37 = vld [vmem:[%s3055_s4] ss:$0 sm:$0xff] }
 0x169   : > { %v1975_v40 = vpop.f32.mrf.mxu0 }
 0x16a   : > { %v2679_v41 = vmax.f32 %v553_v39, 0.0  ;;  %v568_v42 = vadd.f32 %v1975_v40, %v2673_v34 }
 0x16b   : > { %v562_v44 = vpop.f32.mrf.mxu0 }
 0x16c   : > { %v2682_v45 = vmax.f32 %v568_v42, 0.0  ;;  %v563_v46 = vadd.f32 %v2673_v34, %v562_v44  ;;  %831 = vmatmul.mubr.f32.vlgmr.msra.gmra.mxu1 %v2679_v41 }
 0x16d   : > { %v1978_v47 = vpop.f32.mrf.mxu0  ;;  %835 = vmatprep.mubr.f32.mxu1 %v667_v43 }
 0x16e   : > { %v2686_v48 = vmax.f32 %v563_v46, 0.0  ;;  %v578_v49 = vadd.f32 %v1978_v47, %v2673_v34 }
 0x16f   : > { %v572_v51 = vpop.f32.mrf.mxu0 }
 0x170   : > { %v2689_v52 = vmax.f32 %v578_v49, 0.0  ;;  %v573_v53 = vadd.f32 %v2673_v34, %v572_v51  ;;  %836 = vmatmul.mubr.f32.gmra.mxu1 %v2676_v38 }
 0x171   : > { %v1981_v54 = vpop.f32.mrf.mxu0  ;;  %840 = vmatprep.mubr.f32.mxu1 %v670_v50 }
 0x172   : > { %v2693_v55 = vmax.f32 %v573_v53, 0.0  ;;  %v588_v56 = vadd.f32 %v1981_v54, %v2673_v34 }
 0x173   : > { %v582_v58 = vpop.f32.mrf.mxu0 }
 0x174   : > { %v2696_v59 = vmax.f32 %v588_v56, 0.0  ;;  %841 = vmatmul.mubr.f32.gmra.mxu1 %v2686_v48  ;;  %v583_v60 = vadd.f32 %v2673_v34, %v582_v58 }
 0x175   : > { %845 = vmatprep.mubr.f32.mxu1 %v673_v57  ;;  %v1984_v61 = vpop.f32.mrf.mxu0 }
 0x176   : > { %v2700_v62 = vmax.f32 %v583_v60, 0.0  ;;  %v598_v63 = vadd.f32 %v1984_v61, %v2673_v34 }
 0x177   : > { %v592_v1 = vpop.f32.mrf.mxu0 }
 0x178   : > { %846 = vmatmul.mubr.f32.gmra.mxu1 %v2682_v45  ;;  %v2704_v2 = vmax.f32 %v598_v63, 0.0  ;;  %v593_v3 = vadd.f32 %v2673_v34, %v592_v1 }
 0x179   : > { %850 = vmatprep.mubr.f32.mxu1 %v676_v0  ;;  %v1987_v4 = vpop.f32.mrf.mxu0 }
 0x17a   : > { %v2707_v5 = vmax.f32 %v593_v3, 0.0  ;;  %v608_v7 = vadd.f32 %v1987_v4, %v2673_v34 }
 0x17b   : > { %v602_v8 = vpop.f32.mrf.mxu0 }
 0x17c   : > { %851 = vmatmul.mubr.f32.gmra.mxu1 %v2693_v55  ;;  %v2711_v9 = vmax.f32 %v608_v7, 0.0  ;;  %v603_v10 = vadd.f32 %v2673_v34, %v602_v8 }
 0x17d   : > { %855 = vmatprep.mubr.f32.mxu1 %v679_v6  ;;  %v1990_v11 = vpop.f32.mrf.mxu0 }
 0x17e   : > { %v2714_v13 = vmax.f32 %v603_v10, 0.0  ;;  %v618_v14 = vadd.f32 %v1990_v11, %v2673_v34 }
 0x17f   : > { %v612_v15 = vpop.f32.mrf.mxu0 }
 0x180   : > { %856 = vmatmul.mubr.f32.gmra.mxu1 %v2689_v52  ;;  %v2718_v16 = vmax.f32 %v618_v14, 0.0  ;;  %v613_v17 = vadd.f32 %v2673_v34, %v612_v15 }
 0x181   : > { %860 = vmatprep.mubr.f32.mxu1 %v682_v12  ;;  %v1993_v18 = vpop.f32.mrf.mxu0 }
 0x182   : > { %v2721_v20 = vmax.f32 %v613_v17, 0.0  ;;  %v628_v21 = vadd.f32 %v1993_v18, %v2673_v34 }
 0x183   : > { %v622_v22 = vpop.f32.mrf.mxu0 }
 0x184   : > { %861 = vmatmul.mubr.f32.gmra.mxu1 %v2700_v62  ;;  %v2725_v23 = vmax.f32 %v628_v21, 0.0  ;;  %v623_v24 = vadd.f32 %v2673_v34, %v622_v22 }
 0x185   : > { %865 = vmatprep.mubr.f32.mxu1 %v685_v19  ;;  %v2028_v35 = vpop.f32.mrf.mxu0 }
 0x186   : > { %v2728_v26 = vmax.f32 %v623_v24, 0.0 }
 0x187   : > { %v977_v42 = vpop.f32.mrf.mxu0 }
 0x188   : > { %866 = vmatmul.mubr.f32.gmra.mxu1 %v2696_v59 }
 0x189   : > { %870 = vmatprep.mubr.f32.mxu1 %v688_v25  ;;  %v2031_v50 = vpop.f32.mrf.mxu0 }
 0x18b   : > { %v987_v58 = vpop.f32.mrf.mxu0 }
 0x18c   : > { %871 = vmatmul.mubr.f32.gmra.mxu1 %v2707_v5 }
 0x18d   : > { %875 = vmatprep.mubr.f32.mxu1 %v691_v27  ;;  %v2034_v3 = vpop.f32.mrf.mxu0 }
 0x18f   : > { %v997_v11 = vpop.f32.mrf.mxu0 }
 0x190   : > { %876 = vmatmul.mubr.f32.gmra.mxu1 %v2704_v2 }
 0x191   : > { %880 = vmatprep.mubr.f32.mxu1 %v694_v28  ;;  %v2037_v21 = vpop.f32.mrf.mxu0 }
 0x194   : > { %881 = vmatmul.mubr.f32.gmra.mxu1 %v2714_v13 }
 0x195   : > { %885 = vmatprep.mubr.f32.mxu1 %v697_v29 }
 0x198   : > { %886 = vmatmul.mubr.f32.gmra.mxu1 %v2711_v9 }
 0x199   : > { %890 = vmatprep.mubr.f32.mxu1 %v700_v30  ;;  %v1007_v30 = vpop.f32.mrf.mxu0 }
 0x19c   : > { %891 = vmatmul.mubr.f32.gmra.mxu1 %v2721_v20 }
 0x19d   : > { %895 = vmatprep.mubr.f32.mxu1 %v703_v31 }
 0x1a0   : > { %896 = vmatmul.mubr.f32.gmra.mxu1 %v2718_v16 }
 0x1a1   : > { %900 = vmatprep.mubr.f32.mxu1 %v706_v32 }
 0x1a4   : > { %901 = vmatmul.mubr.f32.gmra.mxu1 %v2728_v26 }
 0x1a5   : > { %905 = vmatprep.mubr.f32.mxu1 %v709_v33 }
 0x1a8   : > { %906 = vmatmul.mubr.f32.gmra.mxu1 %v2725_v23 }
 0x22c   : > { %v1858_v34 = vpop.f32.mrf.mxu1 }
 0x22e   : > { %v1859_v36 = vpop.f32.mrf.mxu1 }
 0x22f   : > { %v1860_v39 = vadd.f32 %v1859_v36, %v1858_v34 }
 0x230   : > { %v1861_v40 = vpop.f32.mrf.mxu1 }
 0x231   : > { %v833_v43 = vadd.f32 %v1860_v39, %v2752_v37  ;;  %v2040_v39 = vpop.f32.mrf.mxu0 }
 0x232   : > { %v1862_v44 = vpop.f32.mrf.mxu1 }
 0x233   : > { %v1863_v46 = vadd.f32 %v1862_v44, %v1861_v40  ;;  %v978_v47 = vadd.f32 %v977_v42, %v833_v43 }
 0x234   : > { %v1864_v49 = vpop.f32.mrf.mxu1 }
 0x235   : > { %v838_v51 = vadd.f32 %v1863_v46, %v2752_v37  ;;  %2146 = vtanh.f32 %v978_v47 }
 0x236   : > { %v1865_v53 = vpop.f32.mrf.mxu1 }
 0x237   : > { %v983_v54 = vadd.f32 %v2028_v35, %v838_v51  ;;  %v1866_v56 = vadd.f32 %v1865_v53, %v1864_v49  ;;  %v1017_v49 = vpop.f32.mrf.mxu0 }
 0x238   : > { %v1867_v57 = vpop.f32.mrf.mxu1 }
 0x239   : > { %2148 = vtanh.f32 %v983_v54  ;;  %v843_v60 = vadd.f32 %v1866_v56, %v2752_v37 }
 0x23a   : > { %v1868_v61 = vpop.f32.mrf.mxu1 }
 0x23b   : > { %v1869_v63 = vadd.f32 %v1868_v61, %v1867_v57  ;;  %v988_v0 = vadd.f32 %v987_v58, %v843_v60  ;;  %v2043_v58 = vpop.f32.mrf.mxu0 }
 0x23c   : > { %v1870_v1 = vpop.f32.mrf.mxu1 }
 0x23d   : > { %v848_v4 = vadd.f32 %v1869_v63, %v2752_v37  ;;  %2150 = vtanh.f32 %v988_v0 }
 0x23e   : > { %v1871_v6 = vpop.f32.mrf.mxu1 }
 0x23f   : > { %v993_v7 = vadd.f32 %v2031_v50, %v848_v4  ;;  %v1872_v8 = vadd.f32 %v1871_v6, %v1870_v1  ;;  %v1027_v4 = vpop.f32.mrf.mxu0 }
 0x240   : > { %v1873_v10 = vpop.f32.mrf.mxu1 }
 0x241   : > { %2152 = vtanh.f32 %v993_v7  ;;  %v853_v12 = vadd.f32 %v1872_v8, %v2752_v37 }
 0x242   : > { %v2759_v14 = vpop.eup %2146  ;;  %v1874_v15 = vpop.f32.mrf.mxu1 }
 0x243   : > { %v1875_v17 = vadd.f32 %v1874_v15, %v1873_v10  ;;  %v998_v18 = vadd.f32 %v997_v11, %v853_v12  ;;  %v2046_v15 = vpop.f32.mrf.mxu0 }
 0x244   : > { %v1876_v19 = vpop.f32.mrf.mxu1 }
 0x245   : > { %v858_v22 = vadd.f32 %v1875_v17, %v2752_v37  ;;  %2154 = vtanh.f32 %v998_v18 }
 0x246   : > { %v2762_v24 = vpop.eup %2148  ;;  %v1877_v25 = vpop.f32.mrf.mxu1 }
 0x247   : > { %v1003_v27 = vadd.f32 %v2034_v3, %v858_v22  ;;  %v1878_v28 = vadd.f32 %v1877_v25, %v1876_v19 }
 0x248   : > { %v1879_v29 = vpop.f32.mrf.mxu1 }
 0x249   : > { %2156 = vtanh.f32 %v1003_v27  ;;  %v863_v31 = vadd.f32 %v1878_v28, %v2752_v37  ;;  %v1037_v27 = vpop.f32.mrf.mxu0 }
 0x24a   : > { %v2765_v32 = vpop.eup %2150  ;;  %v1880_v33 = vpop.f32.mrf.mxu1 }
 0x24b   : > { %v1881_v34 = vadd.f32 %v1880_v33, %v1879_v29  ;;  %v1008_v35 = vadd.f32 %v1007_v30, %v863_v31 }
 0x24c   : > { %v1882_v36 = vpop.f32.mrf.mxu1 }
 0x24d   : > { %v868_v40 = vadd.f32 %v1881_v34, %v2752_v37  ;;  %2158 = vtanh.f32 %v1008_v35  ;;  %v2049_v35 = vpop.f32.mrf.mxu0 }
 0x24e   : > { %v2768_v42 = vpop.eup %2152  ;;  %v1883_v43 = vpop.f32.mrf.mxu1 }
 0x24f   : > { %v1013_v44 = vadd.f32 %v2037_v21, %v868_v40  ;;  %v1884_v46 = vadd.f32 %v1883_v43, %v1882_v36 }
 0x250   : > { %v1885_v47 = vpop.f32.mrf.mxu1 }
 0x251   : > { %2160 = vtanh.f32 %v1013_v44  ;;  %v873_v50 = vadd.f32 %v1884_v46, %v2752_v37 }
 0x252   : > { %v2771_v51 = vpop.eup %2154  ;;  %v1886_v53 = vpop.f32.mrf.mxu1 }
 0x253   : > { %v1887_v54 = vadd.f32 %v1886_v53, %v1885_v47  ;;  %v1018_v56 = vadd.f32 %v1017_v49, %v873_v50  ;;  %v1047_v47 = vpop.f32.mrf.mxu0 }
 0x254   : > { %v1888_v57 = vpop.f32.mrf.mxu1 }
 0x255   : > { %v878_v60 = vadd.f32 %v1887_v54, %v2752_v37  ;;  %2162 = vtanh.f32 %v1018_v56 }
 0x256   : > { %v2774_v61 = vpop.eup %2156  ;;  %v1889_v63 = vpop.f32.mrf.mxu1 }
 0x257   : > { %v1023_v0 = vadd.f32 %v2040_v39, %v878_v60  ;;  %v1890_v1 = vadd.f32 %v1889_v63, %v1888_v57 }
 0x258   : > { %v1891_v3 = vpop.f32.mrf.mxu1 }
 0x259   : > { %2164 = vtanh.f32 %v1023_v0  ;;  %v883_v6 = vadd.f32 %v1890_v1, %v2752_v37 }
 0x25a   : > { %v2777_v7 = vpop.eup %2158  ;;  %v1892_v8 = vpop.f32.mrf.mxu1 }
 0x25b   : > { %v1893_v10 = vadd.f32 %v1892_v8, %v1891_v3  ;;  %v1028_v11 = vadd.f32 %v1027_v4, %v883_v6 }
 0x25c   : > { %v1894_v12 = vpop.f32.mrf.mxu1 }
 0x25d   : > { %v888_v17 = vadd.f32 %v1893_v10, %v2752_v37  ;;  %2166 = vtanh.f32 %v1028_v11 }
 0x25e   : > { %v2780_v18 = vpop.eup %2160  ;;  %v1895_v19 = vpop.f32.mrf.mxu1 }
 0x25f   : > { %v1033_v21 = vadd.f32 %v2043_v58, %v888_v17  ;;  %v1896_v22 = vadd.f32 %v1895_v19, %v1894_v12 }
 0x260   : > { %v1897_v25 = vpop.f32.mrf.mxu1 }
 0x261   : > { %2168 = vtanh.f32 %v1033_v21  ;;  %v893_v28 = vadd.f32 %v1896_v22, %v2752_v37 }
 0x262   : > { %v2783_v29 = vpop.eup %2162  ;;  %v1898_v30 = vpop.f32.mrf.mxu1 }
 0x263   : > { %v1899_v31 = vadd.f32 %v1898_v30, %v1897_v25  ;;  %v1038_v33 = vadd.f32 %v1037_v27, %v893_v28 }
 0x264   : > { %v1900_v34 = vpop.f32.mrf.mxu1 }
 0x265   : > { %v898_v36 = vadd.f32 %v1899_v31, %v2752_v37  ;;  %2170 = vtanh.f32 %v1038_v33 }
 0x266   : > { %v2786_v39 = vpop.eup %2164  ;;  %v1901_v40 = vpop.f32.mrf.mxu1 }
 0x267   : > { %v1043_v43 = vadd.f32 %v2046_v15, %v898_v36  ;;  %v1902_v44 = vadd.f32 %v1901_v40, %v1900_v34 }
 0x268   : > { %v1903_v46 = vpop.f32.mrf.mxu1 }
 0x269   : > { %2172 = vtanh.f32 %v1043_v43  ;;  %v903_v49 = vadd.f32 %v1902_v44, %v2752_v37 }
 0x26a   : > { %v2789_v50 = vpop.eup %2166  ;;  %v1904_v53 = vpop.f32.mrf.mxu1 }
 0x26b   : > { %v1905_v54 = vadd.f32 %v1904_v53, %v1903_v46  ;;  %v1048_v56 = vadd.f32 %v1047_v47, %v903_v49 }
 0x26d   : > { %v908_v57 = vadd.f32 %v1905_v54, %v2752_v37  ;;  %2174 = vtanh.f32 %v1048_v56 }
 0x26e   : > { %v2792_v58 = vpop.eup %2168 }
 0x26f   : > { %v1053_v60 = vadd.f32 %v2049_v35, %v908_v57 }
 0x271   : > { %2176 = vtanh.f32 %v1053_v60 }
 0x272   : > { %v2794_v63 = vpop.eup %2170 }
 0x276   : > { %v2796_v0 = vpop.eup %2172 }
 0x27a   : > { %v2798_v1 = vpop.eup %2174  ;;  %1087 = sbr.rel (%p1778_p3) target bundleno = 658 (0x292), region = 60 }
 0x27e   : > { %v2800_v3 = vpop.eup %2176 }
 0x27f   : > { %v1088_v4 = vld [vmem:[#allocation4 + $0x158] sm:$0xff]  ;;  %v1104_v6 = vld [vmem:[#allocation2 + $0xb0] sm:$0xff]  ;;  %v1105_v10 = vld [vmem:[#allocation2] sm:$0xff] }
 0x280   : > { %v1089_v8 = vld [vmem:[#allocation4 + $0xf8] sm:$0xff]  ;;  %v1120_v37 = vsub.f32 %v2679_v41, %v1104_v6  ;;  %1168 = vst [vmem:[#allocation2 + $0xb0] sm:$0xff] %v2679_v41  ;;  %v1090_v11 = vld [vmem:[#allocation4 + $0x100] sm:$0xff]  ;;  %v1121_v15 = vsub.f32 %v2676_v38, %v1105_v10  ;;  %1169 = vst [vmem:[#allocation2] sm:$0xff] %v2676_v38 }
 0x281   : > { %v1106_v12 = vld [vmem:[#allocation2 + $0xd8] sm:$0xff]  ;;  %v1091_v19 = vld [vmem:[#allocation4 + $0xc8] sm:$0xff]  ;;  %v1092_v22 = vld [vmem:[#allocation4 + $0x80] sm:$0xff] }
 0x282   : > { %v1122_v17 = vsub.f32 %v2686_v48, %v1106_v12  ;;  %1170 = vst [vmem:[#allocation2 + $0xd8] sm:$0xff] %v2686_v48  ;;  %v1107_v21 = vld [vmem:[#allocation2 + $0x18] sm:$0xff]  ;;  %v1136_v25 = vadd.f32 %v1120_v37, %v1088_v4  ;;  %v1108_v28 = vld [vmem:[#allocation2 + $0x50] sm:$0xff]  ;;  %v1109_v31 = vld [vmem:[#allocation2 + $0x68] sm:$0xff]  ;;  %v1137_v33 = vadd.f32 %v1121_v15, %v1089_v8 }
 0x283   : > { %v1123_v27 = vsub.f32 %v2682_v45, %v1107_v21  ;;  %1171 = vst [vmem:[#allocation2 + $0x18] sm:$0xff] %v2682_v45  ;;  %v1093_v30 = vld [vmem:[#allocation4 + $0x90] sm:$0xff]  ;;  %v1124_v35 = vsub.f32 %v2693_v55, %v1108_v28  ;;  %1172 = vst [vmem:[#allocation2 + $0x50] sm:$0xff] %v2693_v55  ;;  %v1125_v36 = vsub.f32 %v2689_v52, %v1109_v31  ;;  %v1094_v40 = vld [vmem:[#allocation4 + $0x40] sm:$0xff] }
 0x284   : > { %v1138_v34 = vadd.f32 %v1122_v17, %v1090_v11  ;;  %1173 = vst [vmem:[#allocation2 + $0x68] sm:$0xff] %v2689_v52  ;;  %v1110_v43 = vld [vmem:[#allocation2 + $0x30] sm:$0xff]  ;;  %v1095_v44 = vld [vmem:[#allocation4 + $0xa0] sm:$0xff]  ;;  %1152 = vst [vmem:[#allocation4 + $0x158] sm:$0xff] %v1136_v25 }
 0x285   : > { %v1139_v46 = vadd.f32 %v1123_v27, %v1091_v19  ;;  %v1126_v47 = vsub.f32 %v2700_v62, %v1110_v43  ;;  %1174 = vst [vmem:[#allocation2 + $0x30] sm:$0xff] %v2700_v62  ;;  %v1111_v49 = vld [vmem:[#allocation2 + $0x48] sm:$0xff]  ;;  %v1096_v53 = vld [vmem:[#allocation4 + $0x170] sm:$0xff]  ;;  %v1112_v54 = vld [vmem:[#allocation2 + $0x80] sm:$0xff]  ;;  %v1140_v56 = vadd.f32 %v1124_v35, %v1092_v22  ;;  %v1141_v57 = vadd.f32 %v1125_v36, %v1093_v30 }
 0x286   : > { %1153 = vst [vmem:[#allocation4 + $0xf8] sm:$0xff] %v1137_v33  ;;  %1154 = vst [vmem:[#allocation4 + $0x100] sm:$0xff] %v1138_v34  ;;  %v1127_v60 = vsub.f32 %v2696_v59, %v1111_v49  ;;  %v1128_v4 = vsub.f32 %v2707_v5, %v1112_v54  ;;  %v1097_v6 = vld [vmem:[#allocation4 + $0x98] sm:$0xff]  ;;  %v1113_v8 = vld [vmem:[#allocation2 + $0x88] sm:$0xff] }
 0x287   : > { %1175 = vst [vmem:[#allocation2 + $0x48] sm:$0xff] %v2696_v59  ;;  %1176 = vst [vmem:[#allocation2 + $0x80] sm:$0xff] %v2707_v5  ;;  %v1098_v37 = vld [vmem:[#allocation4 + $0x130] sm:$0xff]  ;;  %v1142_v10 = vadd.f32 %v1126_v47, %v1094_v40  ;;  %v1129_v11 = vsub.f32 %v2704_v2, %v1113_v8  ;;  %v1114_v12 = vld [vmem:[#allocation2 + $0xe8] sm:$0xff] }
 0x288   : > { %1155 = vst [vmem:[#allocation4 + $0xc8] sm:$0xff] %v1139_v46  ;;  %1177 = vst [vmem:[#allocation2 + $0x88] sm:$0xff] %v2704_v2  ;;  %v1099_v15 = vld [vmem:[#allocation4 + $0x150] sm:$0xff]  ;;  %v1115_v17 = vld [vmem:[#allocation2 + $0xb8] sm:$0xff]  ;;  %v1143_v19 = vadd.f32 %v1127_v60, %v1095_v44  ;;  %v1144_v21 = vadd.f32 %v1128_v4, %v1096_v53  ;;  %v1130_v22 = vsub.f32 %v2714_v13, %v1114_v12 }
 0x289   : > { %1156 = vst [vmem:[#allocation4 + $0x80] sm:$0xff] %v1140_v56  ;;  %1157 = vst [vmem:[#allocation4 + $0x90] sm:$0xff] %v1141_v57  ;;  %v1131_v25 = vsub.f32 %v2711_v9, %v1115_v17  ;;  %v1100_v27 = vld [vmem:[#allocation4 + $0x108] sm:$0xff]  ;;  %v1116_v28 = vld [vmem:[#allocation2 + $0x60] sm:$0xff]  ;;  %v1145_v31 = vadd.f32 %v1129_v11, %v1097_v6 }
 0x28a   : > { %1178 = vst [vmem:[#allocation2 + $0xe8] sm:$0xff] %v2714_v13  ;;  %1179 = vst [vmem:[#allocation2 + $0xb8] sm:$0xff] %v2711_v9  ;;  %v1101_v30 = vld [vmem:[#allocation4 + $0xb0] sm:$0xff]  ;;  %v1132_v33 = vsub.f32 %v2721_v20, %v1116_v28  ;;  %v1102_v35 = vld [vmem:[#allocation4 + $0x178] sm:$0xff]  ;;  %v1146_v40 = vadd.f32 %v1130_v22, %v1098_v37 }
 0x28b   : > { %1158 = vst [vmem:[#allocation4 + $0x40] sm:$0xff] %v1142_v10  ;;  %1180 = vst [vmem:[#allocation2 + $0x60] sm:$0xff] %v2721_v20  ;;  %v1117_v34 = vld [vmem:[#allocation2 + $0xf0] sm:$0xff]  ;;  %v1118_v36 = vld [vmem:[#allocation2 + $0x8] sm:$0xff]  ;;  %v1147_v43 = vadd.f32 %v1131_v25, %v1099_v15 }
 0x28c   : > { %1159 = vst [vmem:[#allocation4 + $0xa0] sm:$0xff] %v1143_v19  ;;  %1160 = vst [vmem:[#allocation4 + $0x170] sm:$0xff] %v1144_v21  ;;  %v1133_v44 = vsub.f32 %v2718_v16, %v1117_v34  ;;  %v1134_v46 = vsub.f32 %v2728_v26, %v1118_v36  ;;  %v1103_v47 = vld [vmem:[#allocation4 + $0x148] sm:$0xff]  ;;  %v1119_v49 = vld [vmem:[#allocation2 + $0x78] sm:$0xff]  ;;  %v1148_v53 = vadd.f32 %v1132_v33, %v1100_v27 }
 0x28d   : > { %1181 = vst [vmem:[#allocation2 + $0xf0] sm:$0xff] %v2718_v16  ;;  %1182 = vst [vmem:[#allocation2 + $0x8] sm:$0xff] %v2728_v26  ;;  %v1135_v54 = vsub.f32 %v2725_v23, %v1119_v49 }
 0x28e   : > { %1161 = vst [vmem:[#allocation4 + $0x98] sm:$0xff] %v1145_v31  ;;  %1183 = vst [vmem:[#allocation2 + $0x78] sm:$0xff] %v2725_v23  ;;  %v1149_v56 = vadd.f32 %v1133_v44, %v1101_v30  ;;  %v1150_v57 = vadd.f32 %v1134_v46, %v1102_v35 }
 0x28f   : > { %1162 = vst [vmem:[#allocation4 + $0x130] sm:$0xff] %v1146_v40  ;;  %1163 = vst [vmem:[#allocation4 + $0x150] sm:$0xff] %v1147_v43  ;;  %v1151_v60 = vadd.f32 %v1135_v54, %v1103_v47 }
 0x290   : > { %1164 = vst [vmem:[#allocation4 + $0x108] sm:$0xff] %v1148_v53  ;;  %1165 = vst [vmem:[#allocation4 + $0xb0] sm:$0xff] %v1149_v56 }
 0x291   : > { %1166 = vst [vmem:[#allocation4 + $0x178] sm:$0xff] %v1150_v57  ;;  %1167 = vst [vmem:[#allocation4 + $0x148] sm:$0xff] %v1151_v60 }
 0x292 PF: > { %p1779_p6 = scmp.ne.s32.totalorder %s3078_s16, 1 }
 0x294   : > { %1187 = sbr.rel (%p1779_p6) target bundleno = 684 (0x2ac), region = 64 }
 0x299   : > { %v1188_v4 = vld [vmem:[#allocation4 + $0x158] sm:$0xff]  ;;  %v1190_v11 = vld [vmem:[#allocation4 + $0x100] sm:$0xff]  ;;  %v1191_v19 = vld [vmem:[#allocation4 + $0xc8] sm:$0xff] }
 0x29a   : > { %v1205_v6 = vld [vmem:[#allocation2 + $0x38] sm:$0xff]  ;;  %v1207_v12 = vld [vmem:[#allocation2 + $0x40] sm:$0xff]  ;;  %v1208_v21 = vld [vmem:[#allocation2 + $0xc8] sm:$0xff] }
 0x29b   : > { %v1189_v8 = vld [vmem:[#allocation4 + $0xf8] sm:$0xff]  ;;  %v1221_v37 = vsub.f32 %v2679_v41, %v1205_v6  ;;  %1269 = vst [vmem:[#allocation2 + $0x38] sm:$0xff] %v2679_v41  ;;  %v1223_v17 = vsub.f32 %v2686_v48, %v1207_v12  ;;  %1271 = vst [vmem:[#allocation2 + $0x40] sm:$0xff] %v2686_v48  ;;  %v1192_v22 = vld [vmem:[#allocation4 + $0x80] sm:$0xff]  ;;  %v1224_v27 = vsub.f32 %v2682_v45, %v1208_v21 }
 0x29c   : > { %v1206_v10 = vld [vmem:[#allocation2 + $0x58] sm:$0xff]  ;;  %1272 = vst [vmem:[#allocation2 + $0xc8] sm:$0xff] %v2682_v45  ;;  %v1209_v28 = vld [vmem:[#allocation2 + $0xe0] sm:$0xff]  ;;  %v1193_v30 = vld [vmem:[#allocation4 + $0x90] sm:$0xff] }
 0x29d   : > { %v1222_v15 = vsub.f32 %v2676_v38, %v1206_v10  ;;  %1270 = vst [vmem:[#allocation2 + $0x58] sm:$0xff] %v2676_v38  ;;  %v1237_v25 = vadd.f32 %v1221_v37, %v1188_v4  ;;  %v1210_v31 = vld [vmem:[#allocation2 + $0x90] sm:$0xff]  ;;  %v1239_v34 = vadd.f32 %v1223_v17, %v1190_v11  ;;  %v1225_v35 = vsub.f32 %v2693_v55, %v1209_v28  ;;  %v1194_v40 = vld [vmem:[#allocation4 + $0x40] sm:$0xff]  ;;  %v1213_v54 = vld [vmem:[#allocation2 + $0xa8] sm:$0xff] }
 0x29e   : > { %1273 = vst [vmem:[#allocation2 + $0xe0] sm:$0xff] %v2693_v55  ;;  %v1226_v36 = vsub.f32 %v2689_v52, %v1210_v31  ;;  %1274 = vst [vmem:[#allocation2 + $0x90] sm:$0xff] %v2689_v52  ;;  %v1211_v43 = vld [vmem:[#allocation2 + $0x70] sm:$0xff]  ;;  %v1195_v44 = vld [vmem:[#allocation4 + $0xa0] sm:$0xff]  ;;  %v1240_v46 = vadd.f32 %v1224_v27, %v1191_v19  ;;  %v1229_v4 = vsub.f32 %v2707_v5, %v1213_v54 }
 0x29f   : > { %v1238_v33 = vadd.f32 %v1222_v15, %v1189_v8  ;;  %1253 = vst [vmem:[#allocation4 + $0x158] sm:$0xff] %v1237_v25  ;;  %v1227_v47 = vsub.f32 %v2700_v62, %v1211_v43  ;;  %1275 = vst [vmem:[#allocation2 + $0x70] sm:$0xff] %v2700_v62  ;;  %v1212_v49 = vld [vmem:[#allocation2 + $0xc0] sm:$0xff]  ;;  %v1196_v53 = vld [vmem:[#allocation4 + $0x170] sm:$0xff]  ;;  %v1241_v56 = vadd.f32 %v1225_v35, %v1192_v22 }
 0x2a0   : > { %1255 = vst [vmem:[#allocation4 + $0x100] sm:$0xff] %v1239_v34  ;;  %v1242_v57 = vadd.f32 %v1226_v36, %v1193_v30  ;;  %v1228_v60 = vsub.f32 %v2696_v59, %v1212_v49  ;;  %1276 = vst [vmem:[#allocation2 + $0xc0] sm:$0xff] %v2696_v59  ;;  %v1197_v6 = vld [vmem:[#allocation4 + $0x98] sm:$0xff]  ;;  %v1214_v8 = vld [vmem:[#allocation2 + $0xd0] sm:$0xff]  ;;  %v1245_v21 = vadd.f32 %v1229_v4, %v1196_v53 }
 0x2a1   : > { %1254 = vst [vmem:[#allocation4 + $0xf8] sm:$0xff] %v1238_v33  ;;  %1277 = vst [vmem:[#allocation2 + $0xa8] sm:$0xff] %v2707_v5  ;;  %v1198_v37 = vld [vmem:[#allocation4 + $0x130] sm:$0xff]  ;;  %v1243_v10 = vadd.f32 %v1227_v47, %v1194_v40  ;;  %v1230_v11 = vsub.f32 %v2704_v2, %v1214_v8  ;;  %v1216_v17 = vld [vmem:[#allocation2 + $0x28] sm:$0xff] }
 0x2a2   : > { %1256 = vst [vmem:[#allocation4 + $0xc8] sm:$0xff] %v1240_v46  ;;  %1278 = vst [vmem:[#allocation2 + $0xd0] sm:$0xff] %v2704_v2  ;;  %v1215_v12 = vld [vmem:[#allocation2 + $0x10] sm:$0xff]  ;;  %v1244_v19 = vadd.f32 %v1228_v60, %v1195_v44  ;;  %v1232_v25 = vsub.f32 %v2711_v9, %v1216_v17  ;;  %v1200_v27 = vld [vmem:[#allocation4 + $0x108] sm:$0xff] }
 0x2a3   : > { %v1199_v15 = vld [vmem:[#allocation4 + $0x150] sm:$0xff]  ;;  %1257 = vst [vmem:[#allocation4 + $0x80] sm:$0xff] %v1241_v56  ;;  %1258 = vst [vmem:[#allocation4 + $0x90] sm:$0xff] %v1242_v57  ;;  %v1231_v22 = vsub.f32 %v2714_v13, %v1215_v12  ;;  %v1217_v28 = vld [vmem:[#allocation2 + $0xa0] sm:$0xff]  ;;  %v1246_v31 = vadd.f32 %v1230_v11, %v1197_v6 }
 0x2a4   : > { %1279 = vst [vmem:[#allocation2 + $0x10] sm:$0xff] %v2714_v13  ;;  %1280 = vst [vmem:[#allocation2 + $0x28] sm:$0xff] %v2711_v9  ;;  %v1201_v30 = vld [vmem:[#allocation4 + $0xb0] sm:$0xff]  ;;  %v1233_v33 = vsub.f32 %v2721_v20, %v1217_v28  ;;  %v1218_v34 = vld [vmem:[#allocation2 + $0xf8] sm:$0xff]  ;;  %v1248_v43 = vadd.f32 %v1232_v25, %v1199_v15 }
 0x2a5   : > { %1259 = vst [vmem:[#allocation4 + $0x40] sm:$0xff] %v1243_v10  ;;  %1281 = vst [vmem:[#allocation2 + $0xa0] sm:$0xff] %v2721_v20  ;;  %v1202_v35 = vld [vmem:[#allocation4 + $0x178] sm:$0xff]  ;;  %v1219_v36 = vld [vmem:[#allocation2 + $0x20] sm:$0xff]  ;;  %v1247_v40 = vadd.f32 %v1231_v22, %v1198_v37  ;;  %v1234_v44 = vsub.f32 %v2718_v16, %v1218_v34 }
 0x2a6   : > { %1260 = vst [vmem:[#allocation4 + $0xa0] sm:$0xff] %v1244_v19  ;;  %1261 = vst [vmem:[#allocation4 + $0x170] sm:$0xff] %v1245_v21  ;;  %v1235_v46 = vsub.f32 %v2728_v26, %v1219_v36  ;;  %v1203_v47 = vld [vmem:[#allocation4 + $0x148] sm:$0xff]  ;;  %v1220_v49 = vld [vmem:[#allocation2 + $0x98] sm:$0xff]  ;;  %v1249_v53 = vadd.f32 %v1233_v33, %v1200_v27 }
 0x2a7   : > { %1282 = vst [vmem:[#allocation2 + $0xf8] sm:$0xff] %v2718_v16  ;;  %1283 = vst [vmem:[#allocation2 + $0x20] sm:$0xff] %v2728_v26  ;;  %v1236_v54 = vsub.f32 %v2725_v23, %v1220_v49  ;;  %v1250_v56 = vadd.f32 %v1234_v44, %v1201_v30 }
 0x2a8   : > { %1262 = vst [vmem:[#allocation4 + $0x98] sm:$0xff] %v1246_v31  ;;  %1284 = vst [vmem:[#allocation2 + $0x98] sm:$0xff] %v2725_v23  ;;  %v1251_v57 = vadd.f32 %v1235_v46, %v1202_v35 }
 0x2a9   : > { %1263 = vst [vmem:[#allocation4 + $0x130] sm:$0xff] %v1247_v40  ;;  %1264 = vst [vmem:[#allocation4 + $0x150] sm:$0xff] %v1248_v43  ;;  %v1252_v60 = vadd.f32 %v1236_v54, %v1203_v47 }
 0x2aa   : > { %1265 = vst [vmem:[#allocation4 + $0x108] sm:$0xff] %v1249_v53  ;;  %1266 = vst [vmem:[#allocation4 + $0xb0] sm:$0xff] %v1250_v56 }
 0x2ab   : > { %1267 = vst [vmem:[#allocation4 + $0x178] sm:$0xff] %v1251_v57  ;;  %1268 = vst [vmem:[#allocation4 + $0x148] sm:$0xff] %v1252_v60 }
 0x2ac PF: > { %2178 = sdivrem.u32 %s2741_s30, 3 }
 0x2b5   : > { %s2179_s8 = spop.drf %2178 }
 0x2b6   : > { %s1290_s21 = ssub.s32 0, %s2179_s8 }
 0x2b7   : > { %s3080_s21 = smov (!%p1072_p1, %s1290_s21), %s2179_s8 }
 0x2b8   : > { %p1782_p7 = scmp.lt.s32.totalorder %s3080_s21, 0  ;;  %s1296_s10 = sadd.s32 3, %s3080_s21 }
 0x2ba   : > { %s3082_s10 = smov (!%p1782_p7, %s1296_s10), %s3080_s21 }
 0x2bb   : > { %p1783_p10 = scmp.ne.s32.totalorder %s3082_s10, 0 }
 0x2bd   : > { %1301 = sbr.rel (%p1783_p10) target bundleno = 726 (0x2d6), region = 68 }
 0x2c2   : > { %v1302_v4 = vld [vmem:[#allocation4 + $0x88] sm:$0xff]  ;;  %v1318_v6 = vld [vmem:[#allocation3 + $0x80] sm:$0xff]  ;;  %v1320_v12 = vld [vmem:[#allocation3 + $0x170] sm:$0xff] }
 0x2c3   : > { %v1303_v8 = vld [vmem:[#allocation4 + $0x168] sm:$0xff]  ;;  %v1334_v37 = vsub.f32 %v2759_v14, %v1318_v6  ;;  %1382 = vst [vmem:[#allocation3 + $0x80] sm:$0xff] %v2759_v14  ;;  %v1336_v17 = vsub.f32 %v2765_v32, %v1320_v12  ;;  %1384 = vst [vmem:[#allocation3 + $0x170] sm:$0xff] %v2765_v32  ;;  %v1305_v19 = vld [vmem:[#allocation4 + $0x140] sm:$0xff] }
 0x2c4   : > { %v1319_v10 = vld [vmem:[#allocation3 + $0xc8] sm:$0xff]  ;;  %v1321_v21 = vld [vmem:[#allocation3 + $0xc0] sm:$0xff]  ;;  %v1306_v22 = vld [vmem:[#allocation4 + $0x10] sm:$0xff] }
 0x2c5   : > { %v1304_v11 = vld [vmem:[#allocation4 + $0x8] sm:$0xff]  ;;  %v1335_v15 = vsub.f32 %v2762_v24, %v1319_v10  ;;  %1383 = vst [vmem:[#allocation3 + $0xc8] sm:$0xff] %v2762_v24  ;;  %v1350_v25 = vadd.f32 %v1334_v37, %v1302_v4  ;;  %v1337_v27 = vsub.f32 %v2768_v42, %v1321_v21  ;;  %1385 = vst [vmem:[#allocation3 + $0xc0] sm:$0xff] %v2768_v42  ;;  %v1307_v30 = vld [vmem:[#allocation4 + $0x30] sm:$0xff] }
 0x2c6   : > { %v1322_v28 = vld [vmem:[#allocation3 + $0x148] sm:$0xff]  ;;  %v1323_v31 = vld [vmem:[#allocation3] sm:$0xff]  ;;  %v1352_v34 = vadd.f32 %v1336_v17, %v1304_v11  ;;  %v1325_v49 = vld [vmem:[#allocation3 + $0xb8] sm:$0xff] }
 0x2c7   : > { %v1351_v33 = vadd.f32 %v1335_v15, %v1303_v8  ;;  %v1338_v35 = vsub.f32 %v2771_v51, %v1322_v28  ;;  %1386 = vst [vmem:[#allocation3 + $0x148] sm:$0xff] %v2771_v51  ;;  %v1339_v36 = vsub.f32 %v2774_v61, %v1323_v31  ;;  %1387 = vst [vmem:[#allocation3] sm:$0xff] %v2774_v61  ;;  %v1308_v40 = vld [vmem:[#allocation4 + $0x160] sm:$0xff]  ;;  %v1324_v43 = vld [vmem:[#allocation3 + $0xa8] sm:$0xff] }
 0x2c8   : > { %v1309_v44 = vld [vmem:[#allocation4 + $0xa8] sm:$0xff]  ;;  %1366 = vst [vmem:[#allocation4 + $0x88] sm:$0xff] %v1350_v25  ;;  %v1353_v46 = vadd.f32 %v1337_v27, %v1305_v19  ;;  %v1340_v47 = vsub.f32 %v2777_v7, %v1324_v43  ;;  %1388 = vst [vmem:[#allocation3 + $0xa8] sm:$0xff] %v2777_v7  ;;  %v1310_v53 = vld [vmem:[#allocation4 + $0x118] sm:$0xff]  ;;  %v1341_v60 = vsub.f32 %v2780_v18, %v1325_v49 }
 0x2c9   : > { %v1326_v54 = vld [vmem:[#allocation3 + $0xf0] sm:$0xff]  ;;  %1367 = vst [vmem:[#allocation4 + $0x168] sm:$0xff] %v1351_v33  ;;  %1368 = vst [vmem:[#allocation4 + $0x8] sm:$0xff] %v1352_v34  ;;  %v1354_v56 = vadd.f32 %v1338_v35, %v1306_v22  ;;  %v1355_v57 = vadd.f32 %v1339_v36, %v1307_v30  ;;  %v1311_v6 = vld [vmem:[#allocation4 + $0x138] sm:$0xff] }
 0x2ca   : > { %1389 = vst [vmem:[#allocation3 + $0xb8] sm:$0xff] %v2780_v18  ;;  %v1342_v4 = vsub.f32 %v2783_v29, %v1326_v54  ;;  %1390 = vst [vmem:[#allocation3 + $0xf0] sm:$0xff] %v2783_v29  ;;  %v1327_v8 = vld [vmem:[#allocation3 + $0x100] sm:$0xff]  ;;  %v1312_v37 = vld [vmem:[#allocation4 + $0x58] sm:$0xff]  ;;  %v1356_v10 = vadd.f32 %v1340_v47, %v1308_v40  ;;  %v1357_v19 = vadd.f32 %v1341_v60, %v1309_v44 }
 0x2cb   : > { %1369 = vst [vmem:[#allocation4 + $0x140] sm:$0xff] %v1353_v46  ;;  %v1343_v11 = vsub.f32 %v2786_v39, %v1327_v8  ;;  %1391 = vst [vmem:[#allocation3 + $0x100] sm:$0xff] %v2786_v39  ;;  %v1328_v12 = vld [vmem:[#allocation3 + $0x8] sm:$0xff]  ;;  %v1313_v15 = vld [vmem:[#allocation4 + $0xf0] sm:$0xff] }
 0x2cc   : > { %v1329_v17 = vld [vmem:[#allocation3 + $0x20] sm:$0xff]  ;;  %1370 = vst [vmem:[#allocation4 + $0x10] sm:$0xff] %v1354_v56  ;;  %1371 = vst [vmem:[#allocation4 + $0x30] sm:$0xff] %v1355_v57  ;;  %v1358_v21 = vadd.f32 %v1342_v4, %v1310_v53  ;;  %v1344_v22 = vsub.f32 %v2789_v50, %v1328_v12  ;;  %v1314_v27 = vld [vmem:[#allocation4 + $0x70] sm:$0xff] }
 0x2cd   : > { %1392 = vst [vmem:[#allocation3 + $0x8] sm:$0xff] %v2789_v50  ;;  %v1345_v25 = vsub.f32 %v2792_v58, %v1329_v17  ;;  %1393 = vst [vmem:[#allocation3 + $0x20] sm:$0xff] %v2792_v58  ;;  %v1330_v28 = vld [vmem:[#allocation3 + $0x68] sm:$0xff]  ;;  %v1315_v30 = vld [vmem:[#allocation4 + $0xc0] sm:$0xff]  ;;  %v1359_v31 = vadd.f32 %v1343_v11, %v1311_v6 }
 0x2ce   : > { %1372 = vst [vmem:[#allocation4 + $0x160] sm:$0xff] %v1356_v10  ;;  %v1346_v33 = vsub.f32 %v2794_v63, %v1330_v28  ;;  %1394 = vst [vmem:[#allocation3 + $0x68] sm:$0xff] %v2794_v63  ;;  %v1331_v34 = vld [vmem:[#allocation3 + $0xd0] sm:$0xff]  ;;  %v1316_v35 = vld [vmem:[#allocation4 + $0x28] sm:$0xff]  ;;  %v1360_v40 = vadd.f32 %v1344_v22, %v1312_v37 }
 0x2cf   : > { %v1332_v36 = vld [vmem:[#allocation3 + $0x158] sm:$0xff]  ;;  %1373 = vst [vmem:[#allocation4 + $0xa8] sm:$0xff] %v1357_v19  ;;  %1374 = vst [vmem:[#allocation4 + $0x118] sm:$0xff] %v1358_v21  ;;  %v1361_v43 = vadd.f32 %v1345_v25, %v1313_v15  ;;  %v1347_v44 = vsub.f32 %v2796_v0, %v1331_v34  ;;  %v1317_v47 = vld [vmem:[#allocation4 + $0x128] sm:$0xff] }
 0x2d0   : > { %1395 = vst [vmem:[#allocation3 + $0xd0] sm:$0xff] %v2796_v0  ;;  %v1348_v46 = vsub.f32 %v2798_v1, %v1332_v36  ;;  %1396 = vst [vmem:[#allocation3 + $0x158] sm:$0xff] %v2798_v1  ;;  %v1333_v49 = vld [vmem:[#allocation3 + $0x48] sm:$0xff]  ;;  %v1362_v53 = vadd.f32 %v1346_v33, %v1314_v27 }
 0x2d1   : > { %1375 = vst [vmem:[#allocation4 + $0x138] sm:$0xff] %v1359_v31  ;;  %v1349_v54 = vsub.f32 %v2800_v3, %v1333_v49  ;;  %1397 = vst [vmem:[#allocation3 + $0x48] sm:$0xff] %v2800_v3  ;;  %v1363_v56 = vadd.f32 %v1347_v44, %v1315_v30 }
 0x2d2   : > { %1376 = vst [vmem:[#allocation4 + $0x58] sm:$0xff] %v1360_v40  ;;  %1377 = vst [vmem:[#allocation4 + $0xf0] sm:$0xff] %v1361_v43  ;;  %v1364_v57 = vadd.f32 %v1348_v46, %v1316_v35 }
 0x2d3   : > { %1378 = vst [vmem:[#allocation4 + $0x70] sm:$0xff] %v1362_v53  ;;  %v1365_v60 = vadd.f32 %v1349_v54, %v1317_v47  ;;  %1379 = vst [vmem:[#allocation4 + $0xc0] sm:$0xff] %v1363_v56 }
 0x2d4   : > { %1380 = vst [vmem:[#allocation4 + $0x28] sm:$0xff] %v1364_v57 }
 0x2d5   : > { %1381 = vst [vmem:[#allocation4 + $0x128] sm:$0xff] %v1365_v60 }
 0x2d6 PF: > { %p1784_p11 = scmp.ne.s32.totalorder %s3082_s10, 1 }
 0x2d8   : > { %1401 = sbr.rel (%p1784_p11) target bundleno = 752 (0x2f0), region = 72 }
 0x2dd   : > { %v1402_v4 = vld [vmem:[#allocation4 + $0x88] sm:$0xff]  ;;  %v1419_v6 = vld [vmem:[#allocation3 + $0x38] sm:$0xff]  ;;  %v1420_v10 = vld [vmem:[#allocation3 + $0x40] sm:$0xff] }
 0x2de   : > { %v1403_v8 = vld [vmem:[#allocation4 + $0x168] sm:$0xff]  ;;  %v1435_v37 = vsub.f32 %v2759_v14, %v1419_v6  ;;  %1483 = vst [vmem:[#allocation3 + $0x38] sm:$0xff] %v2759_v14  ;;  %v1436_v15 = vsub.f32 %v2762_v24, %v1420_v10  ;;  %1484 = vst [vmem:[#allocation3 + $0x40] sm:$0xff] %v2762_v24  ;;  %v1405_v19 = vld [vmem:[#allocation4 + $0x140] sm:$0xff] }
 0x2df   : > { %v1404_v11 = vld [vmem:[#allocation4 + $0x8] sm:$0xff]  ;;  %v1422_v21 = vld [vmem:[#allocation3 + $0x18] sm:$0xff]  ;;  %v1406_v22 = vld [vmem:[#allocation4 + $0x10] sm:$0xff] }
 0x2e0   : > { %v1421_v12 = vld [vmem:[#allocation3 + $0xe8] sm:$0xff]  ;;  %v1451_v25 = vadd.f32 %v1435_v37, %v1402_v4  ;;  %v1438_v27 = vsub.f32 %v2768_v42, %v1422_v21  ;;  %1486 = vst [vmem:[#allocation3 + $0x18] sm:$0xff] %v2768_v42  ;;  %v1423_v28 = vld [vmem:[#allocation3 + $0x138] sm:$0xff]  ;;  %v1407_v30 = vld [vmem:[#allocation4 + $0x30] sm:$0xff]  ;;  %v1452_v33 = vadd.f32 %v1436_v15, %v1403_v8 }
 0x2e1   : > { %v1437_v17 = vsub.f32 %v2765_v32, %v1421_v12  ;;  %1485 = vst [vmem:[#allocation3 + $0xe8] sm:$0xff] %v2765_v32  ;;  %v1424_v31 = vld [vmem:[#allocation3 + $0xe0] sm:$0xff]  ;;  %v1439_v35 = vsub.f32 %v2771_v51, %v1423_v28  ;;  %1487 = vst [vmem:[#allocation3 + $0x138] sm:$0xff] %v2771_v51  ;;  %v1425_v43 = vld [vmem:[#allocation3 + $0x150] sm:$0xff] }
 0x2e2   : > { %v1440_v36 = vsub.f32 %v2774_v61, %v1424_v31  ;;  %1488 = vst [vmem:[#allocation3 + $0xe0] sm:$0xff] %v2774_v61  ;;  %v1408_v40 = vld [vmem:[#allocation4 + $0x160] sm:$0xff]  ;;  %v1409_v44 = vld [vmem:[#allocation4 + $0xa8] sm:$0xff]  ;;  %1467 = vst [vmem:[#allocation4 + $0x88] sm:$0xff] %v1451_v25  ;;  %v1454_v46 = vadd.f32 %v1438_v27, %v1405_v19  ;;  %v1441_v47 = vsub.f32 %v2777_v7, %v1425_v43 }
 0x2e3   : > { %v1453_v34 = vadd.f32 %v1437_v17, %v1404_v11  ;;  %1489 = vst [vmem:[#allocation3 + $0x150] sm:$0xff] %v2777_v7  ;;  %v1426_v49 = vld [vmem:[#allocation3 + $0xa0] sm:$0xff]  ;;  %v1410_v53 = vld [vmem:[#allocation4 + $0x118] sm:$0xff]  ;;  %v1427_v54 = vld [vmem:[#allocation3 + $0x128] sm:$0xff]  ;;  %v1455_v56 = vadd.f32 %v1439_v35, %v1406_v22 }
 0x2e4   : > { %1468 = vst [vmem:[#allocation4 + $0x168] sm:$0xff] %v1452_v33  ;;  %v1456_v57 = vadd.f32 %v1440_v36, %v1407_v30  ;;  %v1442_v60 = vsub.f32 %v2780_v18, %v1426_v49  ;;  %1490 = vst [vmem:[#allocation3 + $0xa0] sm:$0xff] %v2780_v18  ;;  %v1443_v4 = vsub.f32 %v2783_v29, %v1427_v54  ;;  %v1411_v6 = vld [vmem:[#allocation4 + $0x138] sm:$0xff]  ;;  %v1428_v8 = vld [vmem:[#allocation3 + $0x110] sm:$0xff] }
 0x2e5   : > { %1469 = vst [vmem:[#allocation4 + $0x8] sm:$0xff] %v1453_v34  ;;  %1491 = vst [vmem:[#allocation3 + $0x128] sm:$0xff] %v2783_v29  ;;  %v1412_v37 = vld [vmem:[#allocation4 + $0x58] sm:$0xff]  ;;  %v1457_v10 = vadd.f32 %v1441_v47, %v1408_v40  ;;  %v1444_v11 = vsub.f32 %v2786_v39, %v1428_v8  ;;  %v1429_v12 = vld [vmem:[#allocation3 + $0x130] sm:$0xff] }
 0x2e6   : > { %1470 = vst [vmem:[#allocation4 + $0x140] sm:$0xff] %v1454_v46  ;;  %1492 = vst [vmem:[#allocation3 + $0x110] sm:$0xff] %v2786_v39  ;;  %v1413_v15 = vld [vmem:[#allocation4 + $0xf0] sm:$0xff]  ;;  %v1430_v17 = vld [vmem:[#allocation3 + $0x120] sm:$0xff]  ;;  %v1458_v19 = vadd.f32 %v1442_v60, %v1409_v44  ;;  %v1459_v21 = vadd.f32 %v1443_v4, %v1410_v53  ;;  %v1445_v22 = vsub.f32 %v2789_v50, %v1429_v12 }
 0x2e7   : > { %1471 = vst [vmem:[#allocation4 + $0x10] sm:$0xff] %v1455_v56  ;;  %1472 = vst [vmem:[#allocation4 + $0x30] sm:$0xff] %v1456_v57  ;;  %v1446_v25 = vsub.f32 %v2792_v58, %v1430_v17  ;;  %v1414_v27 = vld [vmem:[#allocation4 + $0x70] sm:$0xff]  ;;  %v1415_v30 = vld [vmem:[#allocation4 + $0xc0] sm:$0xff]  ;;  %v1460_v31 = vadd.f32 %v1444_v11, %v1411_v6 }
 0x2e8   : > { %1493 = vst [vmem:[#allocation3 + $0x130] sm:$0xff] %v2789_v50  ;;  %1494 = vst [vmem:[#allocation3 + $0x120] sm:$0xff] %v2792_v58  ;;  %v1431_v28 = vld [vmem:[#allocation3 + $0x90] sm:$0xff]  ;;  %v1432_v34 = vld [vmem:[#allocation3 + $0x88] sm:$0xff]  ;;  %v1461_v40 = vadd.f32 %v1445_v22, %v1412_v37 }
 0x2e9   : > { %1473 = vst [vmem:[#allocation4 + $0x160] sm:$0xff] %v1457_v10  ;;  %v1447_v33 = vsub.f32 %v2794_v63, %v1431_v28  ;;  %1495 = vst [vmem:[#allocation3 + $0x90] sm:$0xff] %v2794_v63  ;;  %v1416_v35 = vld [vmem:[#allocation4 + $0x28] sm:$0xff]  ;;  %v1433_v36 = vld [vmem:[#allocation3 + $0xd8] sm:$0xff]  ;;  %v1462_v43 = vadd.f32 %v1446_v25, %v1413_v15  ;;  %v1448_v44 = vsub.f32 %v2796_v0, %v1432_v34 }
 0x2ea   : > { %1474 = vst [vmem:[#allocation4 + $0xa8] sm:$0xff] %v1458_v19  ;;  %1475 = vst [vmem:[#allocation4 + $0x118] sm:$0xff] %v1459_v21  ;;  %v1449_v46 = vsub.f32 %v2798_v1, %v1433_v36  ;;  %v1417_v47 = vld [vmem:[#allocation4 + $0x128] sm:$0xff]  ;;  %v1434_v49 = vld [vmem:[#allocation3 + $0x50] sm:$0xff] }
 0x2eb   : > { %1496 = vst [vmem:[#allocation3 + $0x88] sm:$0xff] %v2796_v0  ;;  %1497 = vst [vmem:[#allocation3 + $0xd8] sm:$0xff] %v2798_v1  ;;  %v1463_v53 = vadd.f32 %v1447_v33, %v1414_v27  ;;  %v1450_v54 = vsub.f32 %v2800_v3, %v1434_v49  ;;  %v1464_v56 = vadd.f32 %v1448_v44, %v1415_v30 }
 0x2ec   : > { %1476 = vst [vmem:[#allocation4 + $0x138] sm:$0xff] %v1460_v31  ;;  %1498 = vst [vmem:[#allocation3 + $0x50] sm:$0xff] %v2800_v3  ;;  %v1465_v57 = vadd.f32 %v1449_v46, %v1416_v35 }
 0x2ed   : > { %1477 = vst [vmem:[#allocation4 + $0x58] sm:$0xff] %v1461_v40  ;;  %1478 = vst [vmem:[#allocation4 + $0xf0] sm:$0xff] %v1462_v43  ;;  %v1466_v60 = vadd.f32 %v1450_v54, %v1417_v47 }
 0x2ee   : > { %1479 = vst [vmem:[#allocation4 + $0x70] sm:$0xff] %v1463_v53  ;;  %1480 = vst [vmem:[#allocation4 + $0xc0] sm:$0xff] %v1464_v56 }
 0x2ef   : > { %1481 = vst [vmem:[#allocation4 + $0x28] sm:$0xff] %v1465_v57  ;;  %1482 = vst [vmem:[#allocation4 + $0x128] sm:$0xff] %v1466_v60 }
 0x2f0 PF: > { %p1785_p12 = scmp.ne.s32.totalorder %s3082_s10, 2 }
 0x2f2   : > { %1502 = sbr.rel (%p1785_p12) target bundleno = 778 (0x30a), region = 76 }
 0x2f7   : > { %v1503_v4 = vld [vmem:[#allocation4 + $0x88] sm:$0xff]  ;;  %v1521_v10 = vld [vmem:[#allocation3 + $0x78] sm:$0xff]  ;;  %v1506_v19 = vld [vmem:[#allocation4 + $0x140] sm:$0xff] }
 0x2f8   : > { %v1520_v6 = vld [vmem:[#allocation3 + $0x168] sm:$0xff]  ;;  %v1522_v12 = vld [vmem:[#allocation3 + $0xf8] sm:$0xff]  ;;  %v1537_v15 = vsub.f32 %v2762_v24, %v1521_v10  ;;  %1585 = vst [vmem:[#allocation3 + $0x78] sm:$0xff] %v2762_v24  ;;  %v1523_v21 = vld [vmem:[#allocation3 + $0x60] sm:$0xff] }
 0x2f9   : > { %v1504_v8 = vld [vmem:[#allocation4 + $0x168] sm:$0xff]  ;;  %v1536_v37 = vsub.f32 %v2759_v14, %v1520_v6  ;;  %1584 = vst [vmem:[#allocation3 + $0x168] sm:$0xff] %v2759_v14  ;;  %v1538_v17 = vsub.f32 %v2765_v32, %v1522_v12  ;;  %1586 = vst [vmem:[#allocation3 + $0xf8] sm:$0xff] %v2765_v32  ;;  %v1507_v22 = vld [vmem:[#allocation4 + $0x10] sm:$0xff]  ;;  %v1539_v27 = vsub.f32 %v2768_v42, %v1523_v21 }
 0x2fa   : > { %v1505_v11 = vld [vmem:[#allocation4 + $0x8] sm:$0xff]  ;;  %1587 = vst [vmem:[#allocation3 + $0x60] sm:$0xff] %v2768_v42  ;;  %v1508_v30 = vld [vmem:[#allocation4 + $0x30] sm:$0xff]  ;;  %v1525_v31 = vld [vmem:[#allocation3 + $0x118] sm:$0xff]  ;;  %v1553_v33 = vadd.f32 %v1537_v15, %v1504_v8 }
 0x2fb   : > { %v1552_v25 = vadd.f32 %v1536_v37, %v1503_v4  ;;  %v1524_v28 = vld [vmem:[#allocation3 + $0x28] sm:$0xff]  ;;  %v1554_v34 = vadd.f32 %v1538_v17, %v1505_v11  ;;  %v1541_v36 = vsub.f32 %v2774_v61, %v1525_v31  ;;  %1589 = vst [vmem:[#allocation3 + $0x118] sm:$0xff] %v2774_v61  ;;  %v1509_v40 = vld [vmem:[#allocation4 + $0x160] sm:$0xff]  ;;  %v1526_v43 = vld [vmem:[#allocation3 + $0xb0] sm:$0xff]  ;;  %v1555_v46 = vadd.f32 %v1539_v27, %v1506_v19 }
 0x2fc   : > { %v1540_v35 = vsub.f32 %v2771_v51, %v1524_v28  ;;  %1588 = vst [vmem:[#allocation3 + $0x28] sm:$0xff] %v2771_v51  ;;  %v1510_v44 = vld [vmem:[#allocation4 + $0xa8] sm:$0xff]  ;;  %v1542_v47 = vsub.f32 %v2777_v7, %v1526_v43  ;;  %1590 = vst [vmem:[#allocation3 + $0xb0] sm:$0xff] %v2777_v7  ;;  %v1527_v49 = vld [vmem:[#allocation3 + $0x10] sm:$0xff] }
 0x2fd   : > { %1568 = vst [vmem:[#allocation4 + $0x88] sm:$0xff] %v1552_v25  ;;  %v1511_v53 = vld [vmem:[#allocation4 + $0x118] sm:$0xff]  ;;  %v1528_v54 = vld [vmem:[#allocation3 + $0x108] sm:$0xff]  ;;  %1569 = vst [vmem:[#allocation4 + $0x168] sm:$0xff] %v1553_v33  ;;  %v1557_v57 = vadd.f32 %v1541_v36, %v1508_v30  ;;  %v1543_v60 = vsub.f32 %v2780_v18, %v1527_v49 }
 0x2fe   : > { %1570 = vst [vmem:[#allocation4 + $0x8] sm:$0xff] %v1554_v34  ;;  %v1556_v56 = vadd.f32 %v1540_v35, %v1507_v22  ;;  %1591 = vst [vmem:[#allocation3 + $0x10] sm:$0xff] %v2780_v18  ;;  %v1544_v4 = vsub.f32 %v2783_v29, %v1528_v54  ;;  %v1512_v6 = vld [vmem:[#allocation4 + $0x138] sm:$0xff]  ;;  %v1529_v8 = vld [vmem:[#allocation3 + $0x70] sm:$0xff]  ;;  %v1558_v10 = vadd.f32 %v1542_v47, %v1509_v40 }
 0x2ff   : > { %1592 = vst [vmem:[#allocation3 + $0x108] sm:$0xff] %v2783_v29  ;;  %v1513_v37 = vld [vmem:[#allocation4 + $0x58] sm:$0xff]  ;;  %1571 = vst [vmem:[#allocation4 + $0x140] sm:$0xff] %v1555_v46  ;;  %v1545_v11 = vsub.f32 %v2786_v39, %v1529_v8  ;;  %v1530_v12 = vld [vmem:[#allocation3 + $0x140] sm:$0xff]  ;;  %v1559_v19 = vadd.f32 %v1543_v60, %v1510_v44 }
 0x300   : > { %1593 = vst [vmem:[#allocation3 + $0x70] sm:$0xff] %v2786_v39  ;;  %v1514_v15 = vld [vmem:[#allocation4 + $0xf0] sm:$0xff]  ;;  %v1531_v17 = vld [vmem:[#allocation3 + $0x98] sm:$0xff]  ;;  %1572 = vst [vmem:[#allocation4 + $0x10] sm:$0xff] %v1556_v56  ;;  %v1560_v21 = vadd.f32 %v1544_v4, %v1511_v53  ;;  %v1546_v22 = vsub.f32 %v2789_v50, %v1530_v12 }
 0x301   : > { %1573 = vst [vmem:[#allocation4 + $0x30] sm:$0xff] %v1557_v57  ;;  %1594 = vst [vmem:[#allocation3 + $0x140] sm:$0xff] %v2789_v50  ;;  %v1547_v25 = vsub.f32 %v2792_v58, %v1531_v17  ;;  %v1515_v27 = vld [vmem:[#allocation4 + $0x70] sm:$0xff]  ;;  %v1532_v28 = vld [vmem:[#allocation3 + $0x58] sm:$0xff]  ;;  %v1561_v31 = vadd.f32 %v1545_v11, %v1512_v6 }
 0x302   : > { %1595 = vst [vmem:[#allocation3 + $0x98] sm:$0xff] %v2792_v58  ;;  %v1516_v30 = vld [vmem:[#allocation4 + $0xc0] sm:$0xff]  ;;  %1574 = vst [vmem:[#allocation4 + $0x160] sm:$0xff] %v1558_v10  ;;  %v1548_v33 = vsub.f32 %v2794_v63, %v1532_v28  ;;  %v1533_v34 = vld [vmem:[#allocation3 + $0x30] sm:$0xff]  ;;  %v1562_v40 = vadd.f32 %v1546_v22, %v1513_v37 }
 0x303   : > { %1596 = vst [vmem:[#allocation3 + $0x58] sm:$0xff] %v2794_v63  ;;  %v1517_v35 = vld [vmem:[#allocation4 + $0x28] sm:$0xff]  ;;  %v1534_v36 = vld [vmem:[#allocation3 + $0x178] sm:$0xff]  ;;  %1575 = vst [vmem:[#allocation4 + $0xa8] sm:$0xff] %v1559_v19  ;;  %v1563_v43 = vadd.f32 %v1547_v25, %v1514_v15  ;;  %v1549_v44 = vsub.f32 %v2796_v0, %v1533_v34 }
 0x304   : > { %1576 = vst [vmem:[#allocation4 + $0x118] sm:$0xff] %v1560_v21  ;;  %1597 = vst [vmem:[#allocation3 + $0x30] sm:$0xff] %v2796_v0  ;;  %v1550_v46 = vsub.f32 %v2798_v1, %v1534_v36  ;;  %v1518_v47 = vld [vmem:[#allocation4 + $0x128] sm:$0xff]  ;;  %v1535_v49 = vld [vmem:[#allocation3 + $0x160] sm:$0xff]  ;;  %v1564_v53 = vadd.f32 %v1548_v33, %v1515_v27 }
 0x305   : > { %1598 = vst [vmem:[#allocation3 + $0x178] sm:$0xff] %v2798_v1  ;;  %1577 = vst [vmem:[#allocation4 + $0x138] sm:$0xff] %v1561_v31  ;;  %v1551_v54 = vsub.f32 %v2800_v3, %v1535_v49  ;;  %v1565_v56 = vadd.f32 %v1549_v44, %v1516_v30 }
 0x306   : > { %1599 = vst [vmem:[#allocation3 + $0x160] sm:$0xff] %v2800_v3  ;;  %1578 = vst [vmem:[#allocation4 + $0x58] sm:$0xff] %v1562_v40  ;;  %v1566_v57 = vadd.f32 %v1550_v46, %v1517_v35 }
 0x307   : > { %1579 = vst [vmem:[#allocation4 + $0xf0] sm:$0xff] %v1563_v43  ;;  %1580 = vst [vmem:[#allocation4 + $0x70] sm:$0xff] %v1564_v53  ;;  %v1567_v60 = vadd.f32 %v1551_v54, %v1518_v47 }
 0x308   : > { %1581 = vst [vmem:[#allocation4 + $0xc0] sm:$0xff] %v1565_v56  ;;  %1582 = vst [vmem:[#allocation4 + $0x28] sm:$0xff] %v1566_v57 }
 0x309   : > { %1583 = vst [vmem:[#allocation4 + $0x128] sm:$0xff] %v1567_v60 }
 0x30a PF: > { %p1786_p13 = scmp.ne.s32.totalorder %s2362_s24, 5 }
 0x30c   : > { %1603 = sbr.rel (%p1786_p13) target bundleno = 801 (0x321), region = 80 }
 0x311   : > { %1604 = vst [vmem:[#allocation11] sm:$0xff] %v2679_v41  ;;  %1605 = vst [vmem:[#allocation11 + $0x8] sm:$0xff] %v2676_v38 }
 0x312   : > { %1606 = vst [vmem:[#allocation11 + $0x10] sm:$0xff] %v2686_v48  ;;  %1607 = vst [vmem:[#allocation11 + $0x18] sm:$0xff] %v2682_v45 }
 0x313   : > { %1608 = vst [vmem:[#allocation11 + $0x20] sm:$0xff] %v2693_v55  ;;  %1609 = vst [vmem:[#allocation11 + $0x28] sm:$0xff] %v2689_v52 }
 0x314   : > { %1610 = vst [vmem:[#allocation11 + $0x30] sm:$0xff] %v2700_v62  ;;  %1611 = vst [vmem:[#allocation11 + $0x38] sm:$0xff] %v2696_v59 }
 0x315   : > { %1612 = vst [vmem:[#allocation11 + $0x40] sm:$0xff] %v2707_v5  ;;  %1613 = vst [vmem:[#allocation11 + $0x48] sm:$0xff] %v2704_v2 }
 0x316   : > { %1614 = vst [vmem:[#allocation11 + $0x50] sm:$0xff] %v2714_v13  ;;  %1615 = vst [vmem:[#allocation11 + $0x58] sm:$0xff] %v2711_v9 }
 0x317   : > { %1616 = vst [vmem:[#allocation11 + $0x60] sm:$0xff] %v2721_v20  ;;  %1617 = vst [vmem:[#allocation11 + $0x68] sm:$0xff] %v2718_v16 }
 0x318   : > { %1618 = vst [vmem:[#allocation11 + $0x70] sm:$0xff] %v2728_v26  ;;  %1619 = vst [vmem:[#allocation11 + $0x78] sm:$0xff] %v2725_v23 }
 0x319   : > { %1620 = vst [vmem:[#allocation12] sm:$0xff] %v2759_v14  ;;  %1621 = vst [vmem:[#allocation12 + $0x8] sm:$0xff] %v2762_v24 }
 0x31a   : > { %1622 = vst [vmem:[#allocation12 + $0x10] sm:$0xff] %v2765_v32  ;;  %1623 = vst [vmem:[#allocation12 + $0x18] sm:$0xff] %v2768_v42 }
 0x31b   : > { %1624 = vst [vmem:[#allocation12 + $0x20] sm:$0xff] %v2771_v51  ;;  %1625 = vst [vmem:[#allocation12 + $0x28] sm:$0xff] %v2774_v61 }
 0x31c   : > { %1626 = vst [vmem:[#allocation12 + $0x30] sm:$0xff] %v2777_v7  ;;  %1627 = vst [vmem:[#allocation12 + $0x38] sm:$0xff] %v2780_v18 }
 0x31d   : > { %1628 = vst [vmem:[#allocation12 + $0x40] sm:$0xff] %v2783_v29  ;;  %1629 = vst [vmem:[#allocation12 + $0x48] sm:$0xff] %v2786_v39 }
 0x31e   : > { %1630 = vst [vmem:[#allocation12 + $0x50] sm:$0xff] %v2789_v50  ;;  %1631 = vst [vmem:[#allocation12 + $0x58] sm:$0xff] %v2792_v58 }
 0x31f   : > { %1632 = vst [vmem:[#allocation12 + $0x60] sm:$0xff] %v2794_v63  ;;  %1633 = vst [vmem:[#allocation12 + $0x68] sm:$0xff] %v2796_v0 }
 0x320   : > { %1634 = vst [vmem:[#allocation12 + $0x70] sm:$0xff] %v2798_v1  ;;  %1635 = vst [vmem:[#allocation12 + $0x78] sm:$0xff] %v2800_v3 }
 0x321 PF: > { %s3066_s24 = sadd.s32 4294967295, %s2370_s26   ;;  %s2378_s7 = smov [#allocation11]  }
 0x322   : > { %p3007_p8 = scmp.eq.s32.totalorder %s3066_s24, 5  ;;  %s1645_s15 = sshll.u32 %s2378_s7, 4  ;;  %s1646_s15 = int_to_ptr.vmem [resolvable:$true] %s1645_s15 }
 0x323   : > { %s2260_s11 = scalar_lea.vmem %s1646_s15, 2048  ;;  %p2267_p5 = scmp.lt.s32.totalorder %s1646_s15, %s1646_s15 }
 0x324   : > { %p2261_p0 = scmp.ne.s32.totalorder %s1646_s15, %s2260_s11  ;;  %p2268_p1 = scmp.lt.s32.totalorder %s2260_s11, %s2260_s11 }
 0x326   : > { %p2262_p2 = pnand %p2261_p0, %p3007_p8  ;;  %p2269_p4 = por %p2268_p1, %p2267_p5 }
 0x328   : > { %p2263_p9 = pneg %p2262_p2 }
 0x32a   : > { %p2270_p3 = pnand %p2269_p4, %p2263_p9 }
 0x32c   : > { %2273 = shalt.err (!%p2270_p3)
}
 0x32d   : > { %s2379_s17 = smov 128   ;;  %s2380_s27 = smov 8  }
 0x32e   : > { %2061 = dma.vmem_to_hbm [thread:$0]  (%p3007_p8), %s1646_s15, 2048, %s3056_s5, [#allocation7], %s2379_s17, %s2379_s17, %s2380_s27  }
 0x32f   : > { %s2381_s30 = smov [#allocation12]  }
 0x330   : > { %s1661_s13 = sshll.u32 %s2381_s30, 4  ;;  %s1662_s13 = int_to_ptr.vmem [resolvable:$true] %s1661_s13 }
 0x331   : > { %s2284_s14 = scalar_lea.vmem %s1662_s13, 2048  ;;  %p2291_p11 = scmp.lt.s32.totalorder %s1662_s13, %s1662_s13 }
 0x332   : > { %p2285_p6 = scmp.ne.s32.totalorder %s1662_s13, %s2284_s14  ;;  %p2292_p12 = scmp.lt.s32.totalorder %s2284_s14, %s2284_s14 }
 0x334   : > { %p2286_p7 = pnand %p2285_p6, %p3007_p8  ;;  %p2293_p13 = por %p2292_p12, %p2291_p11 }
 0x336   : > { %p2287_p10 = pneg %p2286_p7 }
 0x338   : > { %p2294_p0 = pnand %p2293_p13, %p2287_p10 }
 0x33a   : > { %2297 = shalt.err (!%p2294_p0)
}
 0x33b   : > { %2063 = dma.vmem_to_hbm [thread:$0]  (%p3007_p8), %s1662_s13, 2048, %s3057_s6, [#allocation13], %s2379_s17, %s2379_s17, %s2380_s27  }
 0x33c   : > { %2341 = dma.done.wait (%p3007_p8), [#allocation7], 2048  }
 0x33d   : > { %2343 = vsyncadd (%p3007_p8), [#allocation7], 4294965248 }
 0x33e   : > { %2345 = dma.done.wait (%p3007_p8), [#allocation13], 2048  }
 0x33f   : > { %2347 = vsyncadd (%p3007_p8), [#allocation13], 4294965248 }
 0x340 PF: > { %s23_s26 = sadd.s32 1, %s2370_s26   ;;  %s3068_s21 = smov %s2354_s22 }
 0x341   : > { %p20_p2 = scmp.ge.s32.totalorder %s23_s26, 8   ;;  %s3069_s22 = smov %s2358_s23 }
 0x342   : > { %s3070_s23 = smov %s2510_s12  ;;  %s3071_s24 = smov %s2366_s25 }
 0x343   : > { %s3072_s25 = smov %s3074_s20  ;;  %22 = sbr.rel (!%p20_p2) target bundleno = 7 (0x7), region = 126 }
 0x348   :  { %1681 = vsyncpa [#allocation6], 1 }
 0x349   :  { %1683 = vsyncpa [#allocation6 + $0x1], 1 }
 0x34a   :  { %1684 = vsyncpa [#allocation9], 1 }
 0x34b   :  { %1685 = vsyncpa [#allocation7], 1 }
 0x34c   :  { %1687 = vsyncpa [#allocation7 + $0x1], 1 }
 0x34d   :  { %1688 = vsyncpa [#allocation13], 1 }

</bundles_post_ra>
